<compile_context>
chip_gen: v5e
topology: v5e:2x2
jax: 0.10.0
libtpu: 0.0.40
codegen_flags: <defaults>
</compile_context>

<pallas_src>
import math
from functools import partial

import jax
import jax.numpy as jnp
from jax.experimental import pallas as pl
from jax.experimental.pallas import tpu as pltpu


def encoder_block_kernel(x_ref,
                         ln1_w_ref, ln1_b_ref,
                         wq_ref, wk_ref, wv_ref,
                         bq_ref, bk_ref, bv_ref,
                         wo_ref, bo_ref,
                         ln2_w_ref, ln2_b_ref,
                         w1_ref, b1_ref,
                         w2_ref, b2_ref,
                         out_ref,
                         *, num_heads, eps):
    H = num_heads
    x_in = x_ref[0]                                     # (S, D) float32
    S, D = x_in.shape
    Dh = D // H
    scale = 1.0 / math.sqrt(Dh)
    cdt = wq_ref.dtype                                  # matmul operand dtype (f32 or bf16)

    # ---- LayerNorm 1 (f32, biased variance, eps=1e-6) ----
    mu = jnp.mean(x_in, axis=-1, keepdims=True)
    var = jnp.mean((x_in - mu) ** 2, axis=-1, keepdims=True)
    h = (x_in - mu) * jax.lax.rsqrt(var + eps)
    h = h * ln1_w_ref[0] + ln1_b_ref[0]                 # (S, D)

    # ---- Q/K/V projections (weights pre-transposed to (D, D)) ----
    hc = h.astype(cdt)
    q = jnp.dot(hc, wq_ref[...], preferred_element_type=jnp.float32) + bq_ref[0]
    k = jnp.dot(hc, wk_ref[...], preferred_element_type=jnp.float32) + bk_ref[0]
    v = jnp.dot(hc, wv_ref[...], preferred_element_type=jnp.float32) + bv_ref[0]
    q = q * scale                                       # fold 1/sqrt(Dh) into q

    # (S, D) -> (H, S, Dh): head dim leading -> one batched MXU contraction.
    qh = jnp.transpose(q.reshape(S, H, Dh), (1, 0, 2)).astype(cdt)
    kh = jnp.transpose(k.reshape(S, H, Dh), (1, 0, 2)).astype(cdt)
    vh = jnp.transpose(v.reshape(S, H, Dh), (1, 0, 2)).astype(cdt)

    s = jnp.einsum('hqd,hkd->hqk', qh, kh,
                   preferred_element_type=jnp.float32)  # (H, S, S), f32
    s = s - jnp.max(s, axis=-1, keepdims=True)
    p = jnp.exp(s)
    denom = jnp.sum(p, axis=-1, keepdims=True)
    p = p * pl.reciprocal(denom, approx=True)           # softmax via EUP reciprocal

    o = jnp.einsum('hqk,hkd->hqd', p.astype(cdt), vh,
                   preferred_element_type=jnp.float32)  # (H, S, Dh)
    attn = jnp.transpose(o, (1, 0, 2)).reshape(S, D)    # (S, D)

    # out_proj (wo pre-transposed to (D, D))
    attn = jnp.dot(attn.astype(cdt), wo_ref[...],
                   preferred_element_type=jnp.float32) + bo_ref[0]

    # dropout (inference) = identity; residual
    x = attn + x_in                                     # (S, D)

    # ---- LayerNorm 2 (f32) ----
    mu2 = jnp.mean(x, axis=-1, keepdims=True)
    var2 = jnp.mean((x - mu2) ** 2, axis=-1, keepdims=True)
    y = (x - mu2) * jax.lax.rsqrt(var2 + eps)
    y = y * ln2_w_ref[0] + ln2_b_ref[0]

    # ---- MLP: Linear -> exact GELU (erf) -> Linear (w1/w2 pre-transposed) ----
    y = jnp.dot(y.astype(cdt), w1_ref[...],
                preferred_element_type=jnp.float32) + b1_ref[0]
    y = 0.5 * y * (1.0 + jax.lax.erf(y * (1.0 / math.sqrt(2.0))))
    y = jnp.dot(y.astype(cdt), w2_ref[...],
                preferred_element_type=jnp.float32) + b2_ref[0]

    out_ref[0] = (x + y).astype(out_ref.dtype)


def _prepare_params(params, matmul_dtype):
    """PyTorch-layout params -> kernel layout (pre-transposed, split, 2-D biases)."""
    D = params["ln1_w"].shape[0]
    w_in = params["in_proj_weight"]            # (3D, D)
    b_in = params["in_proj_bias"]              # (3D,)
    mdt = matmul_dtype
    row2 = lambda a: a.reshape(1, -1).astype(jnp.float32)
    return (
        row2(params["ln1_w"]), row2(params["ln1_b"]),
        w_in[0 * D:1 * D].T.astype(mdt),       # Wq^T (D, D)
        w_in[1 * D:2 * D].T.astype(mdt),       # Wk^T
        w_in[2 * D:3 * D].T.astype(mdt),       # Wv^T
        row2(b_in[0 * D:1 * D]), row2(b_in[1 * D:2 * D]), row2(b_in[2 * D:3 * D]),
        params["out_proj_w"].T.astype(mdt),    # Wo^T (D, D)
        row2(params["out_proj_b"]),
        row2(params["ln2_w"]), row2(params["ln2_b"]),
        params["w1"].T.astype(mdt),            # (D, M)
        row2(params["b1"]),
        params["w2"].T.astype(mdt),            # (M, D)
        row2(params["b2"]),
    )


def _cost_estimate(B, S, D, M, H, weight_args):
    flops = B * (8 * S * D * D + 4 * S * S * D + 4 * S * D * M)
    transcendentals = B * (H * S * S + S * M + 2 * S)          # exp + erf + rsqrt
    param_bytes = sum(int(a.size) * a.dtype.itemsize for a in weight_args)
    bytes_accessed = 2 * B * S * D * 4 + B * param_bytes
    return pl.CostEstimate(flops=int(flops),
                           transcendentals=int(transcendentals),
                           bytes_accessed=int(bytes_accessed))


def encoder_block(x, params, *, num_heads, matmul_dtype=jnp.float32):
    B, S, D = x.shape
    M = params["w1"].shape[0]
    weight_args = _prepare_params(params, matmul_dtype)

    full = lambda a: pl.BlockSpec(a.shape, lambda b: (0,) * a.ndim)
    kernel = partial(encoder_block_kernel, num_heads=num_heads, eps=1e-6)

    return pl.pallas_call(
        kernel,
        out_shape=jax.ShapeDtypeStruct((B, S, D), x.dtype),
        grid_spec=pltpu.PrefetchScalarGridSpec(
            num_scalar_prefetch=0,
            grid=(B,),
            in_specs=[pl.BlockSpec((1, S, D), lambda b: (b, 0, 0))]
                     + [full(w) for w in weight_args],
            out_specs=pl.BlockSpec((1, S, D), lambda b: (b, 0, 0)),
        ),
        compiler_params=pltpu.CompilerParams(
            dimension_semantics=("parallel",),
            vmem_limit_bytes=64 * 1024 * 1024),
        cost_estimate=_cost_estimate(B, S, D, M, num_heads, weight_args),
    )(x, *weight_args)


def encoder_block_reference(x, params, *, num_heads):
    """Pure-JAX reference matching the PyTorch module (eval mode)."""
    B, S, D = x.shape
    H = num_heads
    Dh = D // H
    eps = 1e-6

    def ln(z, w, b):
        mu = jnp.mean(z, axis=-1, keepdims=True)
        var = jnp.mean((z - mu) ** 2, axis=-1, keepdims=True)
        return (z - mu) * jax.lax.rsqrt(var + eps) * w + b

    h = ln(x, params["ln1_w"], params["ln1_b"])
    qkv = h @ params["in_proj_weight"].T + params["in_proj_bias"]
    q, k, v = jnp.split(qkv, 3, axis=-1)
    heads = lambda t: jnp.transpose(t.reshape(B, S, H, Dh), (0, 2, 1, 3))
    qh, kh, vh = heads(q), heads(k), heads(v)
    s = jnp.einsum('bhqd,bhkd->bhqk', qh, kh) / math.sqrt(Dh)
    p = jax.nn.softmax(s, axis=-1)
    o = jnp.einsum('bhqk,bhkd->bhqd', p, vh)
    o = jnp.transpose(o, (0, 2, 1, 3)).reshape(B, S, D)
    o = o @ params["out_proj_w"].T + params["out_proj_b"]
    x2 = o + x
    y = ln(x2, params["ln2_w"], params["ln2_b"])
    y = y @ params["w1"].T + params["b1"]
    y = 0.5 * y * (1.0 + jax.lax.erf(y / math.sqrt(2.0)))
    y = y @ params["w2"].T + params["b2"]
    return x2 + y


def init_params(key, hidden_dim, mlp_dim):
    D, M = hidden_dim, mlp_dim
    ks = jax.random.split(key, 6)
    bound_attn = math.sqrt(3.0 / D)
    uni = lambda k, shape, b: jax.random.uniform(k, shape, jnp.float32, -b, b)
    return {
        "ln1_w": jnp.ones((D,), jnp.float32),
        "ln1_b": jnp.zeros((D,), jnp.float32),
        "in_proj_weight": uni(ks[0], (3 * D, D), bound_attn),
        "in_proj_bias": jnp.zeros((3 * D,), jnp.float32),
        "out_proj_w": uni(ks[1], (D, D), bound_attn),
        "out_proj_b": jnp.zeros((D,), jnp.float32),
        "ln2_w": jnp.ones((D,), jnp.float32),
        "ln2_b": jnp.zeros((D,), jnp.float32),
        "w1": uni(ks[2], (M, D), math.sqrt(1.0 / D)),
        "b1": uni(ks[3], (M,), math.sqrt(1.0 / D)),
        "w2": uni(ks[4], (D, M), math.sqrt(1.0 / M)),
        "b2": uni(ks[5], (D,), math.sqrt(1.0 / M)),
    }


if __name__ == "__main__":
    B, S, D, H, MLP = 2, 8, 32, 4, 64
    key = jax.random.PRNGKey(0)
    kx, kp = jax.random.split(key)
    x = jax.random.normal(kx, (B, S, D), jnp.float32)
    params = init_params(kp, D, MLP)

    out = encoder_block(x, params, num_heads=H)
    jax.block_until_ready(out)
    assert out.shape == (B, S, D)

    ref = encoder_block_reference(x, params, num_heads=H)
    err = float(jnp.max(jnp.abs(out - ref)))
    assert err < 2e-2, f"kernel deviates from reference: max|diff|={err}"

    # bf16 matmul operands with f32 accumulation (fast inference path).
    out_bf16 = encoder_block(x, params, num_heads=H, matmul_dtype=jnp.bfloat16)
    jax.block_until_ready(out_bf16)
    assert out_bf16.shape == (B, S, D)
    assert bool(jnp.all(jnp.isfinite(out_bf16)))

    print("KERNEL_OK")
</pallas_src>

<mosaic_0001>
module attributes {stable_mosaic.version = 11 : i64} {
  func.func @encoder_block_kernel(%arg0: i32, %arg1: memref<1x8x32xf32, #tpu.memory_space<vmem>>, %arg2: memref<1x32xf32, #tpu.memory_space<vmem>>, %arg3: memref<1x32xf32, #tpu.memory_space<vmem>>, %arg4: memref<32x32xf32, #tpu.memory_space<vmem>>, %arg5: memref<32x32xf32, #tpu.memory_space<vmem>>, %arg6: memref<32x32xf32, #tpu.memory_space<vmem>>, %arg7: memref<1x32xf32, #tpu.memory_space<vmem>>, %arg8: memref<1x32xf32, #tpu.memory_space<vmem>>, %arg9: memref<1x32xf32, #tpu.memory_space<vmem>>, %arg10: memref<32x32xf32, #tpu.memory_space<vmem>>, %arg11: memref<1x32xf32, #tpu.memory_space<vmem>>, %arg12: memref<1x32xf32, #tpu.memory_space<vmem>>, %arg13: memref<1x32xf32, #tpu.memory_space<vmem>>, %arg14: memref<32x64xf32, #tpu.memory_space<vmem>>, %arg15: memref<1x64xf32, #tpu.memory_space<vmem>>, %arg16: memref<64x32xf32, #tpu.memory_space<vmem>>, %arg17: memref<1x32xf32, #tpu.memory_space<vmem>>, %arg18: memref<1x8x32xf32, #tpu.memory_space<vmem>>) attributes {dimension_semantics = [#tpu.dimension_semantics<parallel>], iteration_bounds = array<i64: 2>, scalar_prefetch = 0 : i64, scratch_operands = 0 : i64, tpu.core_type = #tpu.core_type<tc>, window_params = [{transform_indices = @transform_0, window_bounds = array<i64: 1, 8, 32>}, {pipeline_mode = #tpu.pipeline_mode<synchronous>, transform_indices = @transform_1, window_bounds = array<i64: 1, 32>}, {pipeline_mode = #tpu.pipeline_mode<synchronous>, transform_indices = @transform_2, window_bounds = array<i64: 1, 32>}, {pipeline_mode = #tpu.pipeline_mode<synchronous>, transform_indices = @transform_3, window_bounds = array<i64: 32, 32>}, {pipeline_mode = #tpu.pipeline_mode<synchronous>, transform_indices = @transform_4, window_bounds = array<i64: 32, 32>}, {pipeline_mode = #tpu.pipeline_mode<synchronous>, transform_indices = @transform_5, window_bounds = array<i64: 32, 32>}, {pipeline_mode = #tpu.pipeline_mode<synchronous>, transform_indices = @transform_6, window_bounds = array<i64: 1, 32>}, {pipeline_mode = #tpu.pipeline_mode<synchronous>, transform_indices = @transform_7, window_bounds = array<i64: 1, 32>}, {pipeline_mode = #tpu.pipeline_mode<synchronous>, transform_indices = @transform_8, window_bounds = array<i64: 1, 32>}, {pipeline_mode = #tpu.pipeline_mode<synchronous>, transform_indices = @transform_9, window_bounds = array<i64: 32, 32>}, {pipeline_mode = #tpu.pipeline_mode<synchronous>, transform_indices = @transform_10, window_bounds = array<i64: 1, 32>}, {pipeline_mode = #tpu.pipeline_mode<synchronous>, transform_indices = @transform_11, window_bounds = array<i64: 1, 32>}, {pipeline_mode = #tpu.pipeline_mode<synchronous>, transform_indices = @transform_12, window_bounds = array<i64: 1, 32>}, {pipeline_mode = #tpu.pipeline_mode<synchronous>, transform_indices = @transform_13, window_bounds = array<i64: 32, 64>}, {pipeline_mode = #tpu.pipeline_mode<synchronous>, transform_indices = @transform_14, window_bounds = array<i64: 1, 64>}, {pipeline_mode = #tpu.pipeline_mode<synchronous>, transform_indices = @transform_15, window_bounds = array<i64: 64, 32>}, {pipeline_mode = #tpu.pipeline_mode<synchronous>, transform_indices = @transform_16, window_bounds = array<i64: 1, 32>}, {transform_indices = @transform_17, window_bounds = array<i64: 1, 8, 32>}]} {
    %c0 = arith.constant 0 : index
    %c0_0 = arith.constant 0 : index
    %c0_1 = arith.constant 0 : index
    %0 = vector.load %arg1[%c0, %c0_0, %c0_1] : memref<1x8x32xf32, #tpu.memory_space<vmem>>, vector<1x8x32xf32>
    %1 = vector.shape_cast %0 : vector<1x8x32xf32> to vector<8x32xf32>
    %cst = arith.constant dense<0.000000e+00> : vector<8xf32>
    %2 = vector.multi_reduction <add>, %1, %cst [1] : vector<8x32xf32> to vector<8xf32>
    %3 = vector.shape_cast %2 : vector<8xf32> to vector<8x1xf32>
    %cst_2 = arith.constant 3.200000e+01 : f32
    %4 = vector.broadcast %cst_2 : f32 to vector<8x1xf32>
    %5 = arith.divf %3, %4 : vector<8x1xf32>
    %6 = vector.broadcast %5 : vector<8x1xf32> to vector<8x32xf32>
    %7 = arith.subf %1, %6 : vector<8x32xf32>
    %8 = arith.mulf %7, %7 : vector<8x32xf32>
    %cst_3 = arith.constant dense<0.000000e+00> : vector<8xf32>
    %9 = vector.multi_reduction <add>, %8, %cst_3 [1] : vector<8x32xf32> to vector<8xf32>
    %10 = vector.shape_cast %9 : vector<8xf32> to vector<8x1xf32>
    %cst_4 = arith.constant 3.200000e+01 : f32
    %11 = vector.broadcast %cst_4 : f32 to vector<8x1xf32>
    %12 = arith.divf %10, %11 : vector<8x1xf32>
    %13 = vector.broadcast %5 : vector<8x1xf32> to vector<8x32xf32>
    %14 = arith.subf %1, %13 : vector<8x32xf32>
    %cst_5 = arith.constant 9.99999997E-7 : f32
    %15 = vector.broadcast %cst_5 : f32 to vector<8x1xf32>
    %16 = arith.addf %12, %15 : vector<8x1xf32>
    %17 = math.rsqrt %16 : vector<8x1xf32>
    %18 = vector.broadcast %17 : vector<8x1xf32> to vector<8x32xf32>
    %19 = arith.mulf %14, %18 : vector<8x32xf32>
    %c0_6 = arith.constant 0 : index
    %c0_7 = arith.constant 0 : index
    %20 = vector.load %arg2[%c0_6, %c0_7] : memref<1x32xf32, #tpu.memory_space<vmem>>, vector<1x32xf32>
    %21 = vector.shape_cast %20 : vector<1x32xf32> to vector<32xf32>
    %22 = vector.shape_cast %21 : vector<32xf32> to vector<1x32xf32>
    %23 = vector.broadcast %22 : vector<1x32xf32> to vector<8x32xf32>
    %24 = arith.mulf %19, %23 : vector<8x32xf32>
    %c0_8 = arith.constant 0 : index
    %c0_9 = arith.constant 0 : index
    %25 = vector.load %arg3[%c0_8, %c0_9] : memref<1x32xf32, #tpu.memory_space<vmem>>, vector<1x32xf32>
    %26 = vector.shape_cast %25 : vector<1x32xf32> to vector<32xf32>
    %27 = vector.shape_cast %26 : vector<32xf32> to vector<1x32xf32>
    %28 = vector.broadcast %27 : vector<1x32xf32> to vector<8x32xf32>
    %29 = arith.addf %24, %28 : vector<8x32xf32>
    %c0_10 = arith.constant 0 : index
    %c0_11 = arith.constant 0 : index
    %30 = vector.load %arg4[%c0_10, %c0_11] : memref<32x32xf32, #tpu.memory_space<vmem>>, vector<32x32xf32>
    %cst_12 = arith.constant dense<0.000000e+00> : vector<8x32xf32>
    %31 = tpu.matmul %29, %30, %cst_12 {dimension_numbers = #tpu.dot_dimension_numbers<[1], [0], [0], [1], [0, 0, 1, 1], [], []>} : vector<8x32xf32>, vector<32x32xf32>, vector<8x32xf32> -> vector<8x32xf32>
    %c0_13 = arith.constant 0 : index
    %c0_14 = arith.constant 0 : index
    %32 = vector.load %arg7[%c0_13, %c0_14] : memref<1x32xf32, #tpu.memory_space<vmem>>, vector<1x32xf32>
    %33 = vector.shape_cast %32 : vector<1x32xf32> to vector<32xf32>
    %34 = vector.shape_cast %33 : vector<32xf32> to vector<1x32xf32>
    %35 = vector.broadcast %34 : vector<1x32xf32> to vector<8x32xf32>
    %36 = arith.addf %31, %35 : vector<8x32xf32>
    %c0_15 = arith.constant 0 : index
    %c0_16 = arith.constant 0 : index
    %37 = vector.load %arg5[%c0_15, %c0_16] : memref<32x32xf32, #tpu.memory_space<vmem>>, vector<32x32xf32>
    %cst_17 = arith.constant dense<0.000000e+00> : vector<8x32xf32>
    %38 = tpu.matmul %29, %37, %cst_17 {dimension_numbers = #tpu.dot_dimension_numbers<[1], [0], [0], [1], [0, 0, 1, 1], [], []>} : vector<8x32xf32>, vector<32x32xf32>, vector<8x32xf32> -> vector<8x32xf32>
    %c0_18 = arith.constant 0 : index
    %c0_19 = arith.constant 0 : index
    %39 = vector.load %arg8[%c0_18, %c0_19] : memref<1x32xf32, #tpu.memory_space<vmem>>, vector<1x32xf32>
    %40 = vector.shape_cast %39 : vector<1x32xf32> to vector<32xf32>
    %41 = vector.shape_cast %40 : vector<32xf32> to vector<1x32xf32>
    %42 = vector.broadcast %41 : vector<1x32xf32> to vector<8x32xf32>
    %43 = arith.addf %38, %42 : vector<8x32xf32>
    %c0_20 = arith.constant 0 : index
    %c0_21 = arith.constant 0 : index
    %44 = vector.load %arg6[%c0_20, %c0_21] : memref<32x32xf32, #tpu.memory_space<vmem>>, vector<32x32xf32>
    %cst_22 = arith.constant dense<0.000000e+00> : vector<8x32xf32>
    %45 = tpu.matmul %29, %44, %cst_22 {dimension_numbers = #tpu.dot_dimension_numbers<[1], [0], [0], [1], [0, 0, 1, 1], [], []>} : vector<8x32xf32>, vector<32x32xf32>, vector<8x32xf32> -> vector<8x32xf32>
    %c0_23 = arith.constant 0 : index
    %c0_24 = arith.constant 0 : index
    %46 = vector.load %arg9[%c0_23, %c0_24] : memref<1x32xf32, #tpu.memory_space<vmem>>, vector<1x32xf32>
    %47 = vector.shape_cast %46 : vector<1x32xf32> to vector<32xf32>
    %48 = vector.shape_cast %47 : vector<32xf32> to vector<1x32xf32>
    %49 = vector.broadcast %48 : vector<1x32xf32> to vector<8x32xf32>
    %50 = arith.addf %45, %49 : vector<8x32xf32>
    %cst_25 = arith.constant 0.353553385 : f32
    %51 = vector.broadcast %cst_25 : f32 to vector<8x32xf32>
    %52 = arith.mulf %36, %51 : vector<8x32xf32>
    %53 = vector.shape_cast %52 : vector<8x32xf32> to vector<8x4x8xf32>
    %54 = tpu.transpose %53, [1, 0, 2] : vector<8x4x8xf32> -> vector<4x8x8xf32>
    %55 = vector.shape_cast %43 : vector<8x32xf32> to vector<8x4x8xf32>
    %56 = tpu.transpose %55, [1, 0, 2] : vector<8x4x8xf32> -> vector<4x8x8xf32>
    %57 = vector.shape_cast %50 : vector<8x32xf32> to vector<8x4x8xf32>
    %58 = tpu.transpose %57, [1, 0, 2] : vector<8x4x8xf32> -> vector<4x8x8xf32>
    "tpu.trace_start"() <{level = 10 : i32, message = "hqd,hkd->hqk"}> : () -> ()
    %cst_26 = arith.constant dense<0.000000e+00> : vector<4x8x8xf32>
    %59 = tpu.matmul %54, %56, %cst_26 {dimension_numbers = #tpu.dot_dimension_numbers<[2], [2], [1], [1], [0, 0, 0, 1, 1, 1], [0], [0]>} : vector<4x8x8xf32>, vector<4x8x8xf32>, vector<4x8x8xf32> -> vector<4x8x8xf32>
    "tpu.trace_stop"() : () -> ()
    %cst_27 = arith.constant dense<0xFF800000> : vector<4x8xf32>
    %60 = vector.multi_reduction <maximumf>, %59, %cst_27 [2] : vector<4x8x8xf32> to vector<4x8xf32>
    %61 = vector.shape_cast %60 : vector<4x8xf32> to vector<4x8x1xf32>
    %62 = vector.broadcast %61 : vector<4x8x1xf32> to vector<4x8x8xf32>
    %63 = arith.subf %59, %62 : vector<4x8x8xf32>
    %64 = math.exp %63 : vector<4x8x8xf32>
    %cst_28 = arith.constant dense<0.000000e+00> : vector<4x8xf32>
    %65 = vector.multi_reduction <add>, %64, %cst_28 [2] : vector<4x8x8xf32> to vector<4x8xf32>
    %66 = vector.shape_cast %65 : vector<4x8xf32> to vector<4x8x1xf32>
    %67 = tpu.reciprocal %66 {approx = true} : vector<4x8x1xf32> -> vector<4x8x1xf32>
    %68 = vector.broadcast %67 : vector<4x8x1xf32> to vector<4x8x8xf32>
    %69 = arith.mulf %64, %68 : vector<4x8x8xf32>
    "tpu.trace_start"() <{level = 10 : i32, message = "hqk,hkd->hqd"}> : () -> ()
    %cst_29 = arith.constant dense<0.000000e+00> : vector<4x8x8xf32>
    %70 = tpu.matmul %69, %58, %cst_29 {dimension_numbers = #tpu.dot_dimension_numbers<[2], [1], [1], [2], [0, 0, 0, 1, 1, 2], [0], [0]>} : vector<4x8x8xf32>, vector<4x8x8xf32>, vector<4x8x8xf32> -> vector<4x8x8xf32>
    "tpu.trace_stop"() : () -> ()
    %71 = tpu.transpose %70, [1, 0, 2] : vector<4x8x8xf32> -> vector<8x4x8xf32>
    %72 = vector.shape_cast %71 : vector<8x4x8xf32> to vector<8x32xf32>
    %c0_30 = arith.constant 0 : index
    %c0_31 = arith.constant 0 : index
    %73 = vector.load %arg10[%c0_30, %c0_31] : memref<32x32xf32, #tpu.memory_space<vmem>>, vector<32x32xf32>
    %cst_32 = arith.constant dense<0.000000e+00> : vector<8x32xf32>
    %74 = tpu.matmul %72, %73, %cst_32 {dimension_numbers = #tpu.dot_dimension_numbers<[1], [0], [0], [1], [0, 0, 1, 1], [], []>} : vector<8x32xf32>, vector<32x32xf32>, vector<8x32xf32> -> vector<8x32xf32>
    %c0_33 = arith.constant 0 : index
    %c0_34 = arith.constant 0 : index
    %75 = vector.load %arg11[%c0_33, %c0_34] : memref<1x32xf32, #tpu.memory_space<vmem>>, vector<1x32xf32>
    %76 = vector.shape_cast %75 : vector<1x32xf32> to vector<32xf32>
    %77 = vector.shape_cast %76 : vector<32xf32> to vector<1x32xf32>
    %78 = vector.broadcast %77 : vector<1x32xf32> to vector<8x32xf32>
    %79 = arith.addf %74, %78 : vector<8x32xf32>
    %80 = arith.addf %79, %1 : vector<8x32xf32>
    %cst_35 = arith.constant dense<0.000000e+00> : vector<8xf32>
    %81 = vector.multi_reduction <add>, %80, %cst_35 [1] : vector<8x32xf32> to vector<8xf32>
    %82 = vector.shape_cast %81 : vector<8xf32> to vector<8x1xf32>
    %cst_36 = arith.constant 3.200000e+01 : f32
    %83 = vector.broadcast %cst_36 : f32 to vector<8x1xf32>
    %84 = arith.divf %82, %83 : vector<8x1xf32>
    %85 = vector.broadcast %84 : vector<8x1xf32> to vector<8x32xf32>
    %86 = arith.subf %80, %85 : vector<8x32xf32>
    %87 = arith.mulf %86, %86 : vector<8x32xf32>
    %cst_37 = arith.constant dense<0.000000e+00> : vector<8xf32>
    %88 = vector.multi_reduction <add>, %87, %cst_37 [1] : vector<8x32xf32> to vector<8xf32>
    %89 = vector.shape_cast %88 : vector<8xf32> to vector<8x1xf32>
    %cst_38 = arith.constant 3.200000e+01 : f32
    %90 = vector.broadcast %cst_38 : f32 to vector<8x1xf32>
    %91 = arith.divf %89, %90 : vector<8x1xf32>
    %92 = vector.broadcast %84 : vector<8x1xf32> to vector<8x32xf32>
    %93 = arith.subf %80, %92 : vector<8x32xf32>
    %cst_39 = arith.constant 9.99999997E-7 : f32
    %94 = vector.broadcast %cst_39 : f32 to vector<8x1xf32>
    %95 = arith.addf %91, %94 : vector<8x1xf32>
    %96 = math.rsqrt %95 : vector<8x1xf32>
    %97 = vector.broadcast %96 : vector<8x1xf32> to vector<8x32xf32>
    %98 = arith.mulf %93, %97 : vector<8x32xf32>
    %c0_40 = arith.constant 0 : index
    %c0_41 = arith.constant 0 : index
    %99 = vector.load %arg12[%c0_40, %c0_41] : memref<1x32xf32, #tpu.memory_space<vmem>>, vector<1x32xf32>
    %100 = vector.shape_cast %99 : vector<1x32xf32> to vector<32xf32>
    %101 = vector.shape_cast %100 : vector<32xf32> to vector<1x32xf32>
    %102 = vector.broadcast %101 : vector<1x32xf32> to vector<8x32xf32>
    %103 = arith.mulf %98, %102 : vector<8x32xf32>
    %c0_42 = arith.constant 0 : index
    %c0_43 = arith.constant 0 : index
    %104 = vector.load %arg13[%c0_42, %c0_43] : memref<1x32xf32, #tpu.memory_space<vmem>>, vector<1x32xf32>
    %105 = vector.shape_cast %104 : vector<1x32xf32> to vector<32xf32>
    %106 = vector.shape_cast %105 : vector<32xf32> to vector<1x32xf32>
    %107 = vector.broadcast %106 : vector<1x32xf32> to vector<8x32xf32>
    %108 = arith.addf %103, %107 : vector<8x32xf32>
    %c0_44 = arith.constant 0 : index
    %c0_45 = arith.constant 0 : index
    %109 = vector.load %arg14[%c0_44, %c0_45] : memref<32x64xf32, #tpu.memory_space<vmem>>, vector<32x64xf32>
    %cst_46 = arith.constant dense<0.000000e+00> : vector<8x64xf32>
    %110 = tpu.matmul %108, %109, %cst_46 {dimension_numbers = #tpu.dot_dimension_numbers<[1], [0], [0], [1], [0, 0, 1, 1], [], []>} : vector<8x32xf32>, vector<32x64xf32>, vector<8x64xf32> -> vector<8x64xf32>
    %c0_47 = arith.constant 0 : index
    %c0_48 = arith.constant 0 : index
    %111 = vector.load %arg15[%c0_47, %c0_48] : memref<1x64xf32, #tpu.memory_space<vmem>>, vector<1x64xf32>
    %112 = vector.shape_cast %111 : vector<1x64xf32> to vector<64xf32>
    %113 = vector.shape_cast %112 : vector<64xf32> to vector<1x64xf32>
    %114 = vector.broadcast %113 : vector<1x64xf32> to vector<8x64xf32>
    %115 = arith.addf %110, %114 : vector<8x64xf32>
    %cst_49 = arith.constant 5.000000e-01 : f32
    %116 = vector.broadcast %cst_49 : f32 to vector<8x64xf32>
    %117 = arith.mulf %116, %115 : vector<8x64xf32>
    %cst_50 = arith.constant 0.707106769 : f32
    %118 = vector.broadcast %cst_50 : f32 to vector<8x64xf32>
    %119 = arith.mulf %115, %118 : vector<8x64xf32>
    %120 = math.erf %119 : vector<8x64xf32>
    %cst_51 = arith.constant 1.000000e+00 : f32
    %121 = vector.broadcast %cst_51 : f32 to vector<8x64xf32>
    %122 = arith.addf %121, %120 : vector<8x64xf32>
    %123 = arith.mulf %117, %122 : vector<8x64xf32>
    %c0_52 = arith.constant 0 : index
    %c0_53 = arith.constant 0 : index
    %124 = vector.load %arg16[%c0_52, %c0_53] : memref<64x32xf32, #tpu.memory_space<vmem>>, vector<64x32xf32>
    %cst_54 = arith.constant dense<0.000000e+00> : vector<8x32xf32>
    %125 = tpu.matmul %123, %124, %cst_54 {dimension_numbers = #tpu.dot_dimension_numbers<[1], [0], [0], [1], [0, 0, 1, 1], [], []>} : vector<8x64xf32>, vector<64x32xf32>, vector<8x32xf32> -> vector<8x32xf32>
    %c0_55 = arith.constant 0 : index
    %c0_56 = arith.constant 0 : index
    %126 = vector.load %arg17[%c0_55, %c0_56] : memref<1x32xf32, #tpu.memory_space<vmem>>, vector<1x32xf32>
    %127 = vector.shape_cast %126 : vector<1x32xf32> to vector<32xf32>
    %128 = vector.shape_cast %127 : vector<32xf32> to vector<1x32xf32>
    %129 = vector.broadcast %128 : vector<1x32xf32> to vector<8x32xf32>
    %130 = arith.addf %125, %129 : vector<8x32xf32>
    %131 = arith.addf %80, %130 : vector<8x32xf32>
    %c0_57 = arith.constant 0 : index
    %c0_58 = arith.constant 0 : index
    %c0_59 = arith.constant 0 : index
    %132 = vector.load %arg18[%c0_57, %c0_58, %c0_59] : memref<1x8x32xf32, #tpu.memory_space<vmem>>, vector<1x8x32xf32>
    %133 = vector.shape_cast %132 : vector<1x8x32xf32> to vector<8x32xf32>
    %134 = vector.shape_cast %131 : vector<8x32xf32> to vector<1x8x32xf32>
    tpu.vector_store %arg18[%c0_57, %c0_58, %c0_59], %134 {strides = array<i32>} : memref<1x8x32xf32, #tpu.memory_space<vmem>>, vector<1x8x32xf32>,
    return
  }
  func.func @transform_0(%arg0: i32) -> (i32, i32, i32) {
    %c0_i32 = arith.constant 0 : i32
    %c0_i32_0 = arith.constant 0 : i32
    %c0_i32_1 = arith.constant 0 : i32
    return %arg0, %c0_i32, %c0_i32_0 : i32, i32, i32
  }
  func.func @transform_1(%arg0: i32) -> (i32, i32) {
    %c0_i32 = arith.constant 0 : i32
    %c0_i32_0 = arith.constant 0 : i32
    %c0_i32_1 = arith.constant 0 : i32
    return %c0_i32, %c0_i32_0 : i32, i32
  }
  func.func @transform_2(%arg0: i32) -> (i32, i32) {
    %c0_i32 = arith.constant 0 : i32
    %c0_i32_0 = arith.constant 0 : i32
    %c0_i32_1 = arith.constant 0 : i32
    return %c0_i32, %c0_i32_0 : i32, i32
  }
  func.func @transform_3(%arg0: i32) -> (i32, i32) {
    %c0_i32 = arith.constant 0 : i32
    %c0_i32_0 = arith.constant 0 : i32
    %c0_i32_1 = arith.constant 0 : i32
    return %c0_i32, %c0_i32_0 : i32, i32
  }
  func.func @transform_4(%arg0: i32) -> (i32, i32) {
    %c0_i32 = arith.constant 0 : i32
    %c0_i32_0 = arith.constant 0 : i32
    %c0_i32_1 = arith.constant 0 : i32
    return %c0_i32, %c0_i32_0 : i32, i32
  }
  func.func @transform_5(%arg0: i32) -> (i32, i32) {
    %c0_i32 = arith.constant 0 : i32
    %c0_i32_0 = arith.constant 0 : i32
    %c0_i32_1 = arith.constant 0 : i32
    return %c0_i32, %c0_i32_0 : i32, i32
  }
  func.func @transform_6(%arg0: i32) -> (i32, i32) {
    %c0_i32 = arith.constant 0 : i32
    %c0_i32_0 = arith.constant 0 : i32
    %c0_i32_1 = arith.constant 0 : i32
    return %c0_i32, %c0_i32_0 : i32, i32
  }
  func.func @transform_7(%arg0: i32) -> (i32, i32) {
    %c0_i32 = arith.constant 0 : i32
    %c0_i32_0 = arith.constant 0 : i32
    %c0_i32_1 = arith.constant 0 : i32
    return %c0_i32, %c0_i32_0 : i32, i32
  }
  func.func @transform_8(%arg0: i32) -> (i32, i32) {
    %c0_i32 = arith.constant 0 : i32
    %c0_i32_0 = arith.constant 0 : i32
    %c0_i32_1 = arith.constant 0 : i32
    return %c0_i32, %c0_i32_0 : i32, i32
  }
  func.func @transform_9(%arg0: i32) -> (i32, i32) {
    %c0_i32 = arith.constant 0 : i32
    %c0_i32_0 = arith.constant 0 : i32
    %c0_i32_1 = arith.constant 0 : i32
    return %c0_i32, %c0_i32_0 : i32, i32
  }
  func.func @transform_10(%arg0: i32) -> (i32, i32) {
    %c0_i32 = arith.constant 0 : i32
    %c0_i32_0 = arith.constant 0 : i32
    %c0_i32_1 = arith.constant 0 : i32
    return %c0_i32, %c0_i32_0 : i32, i32
  }
  func.func @transform_11(%arg0: i32) -> (i32, i32) {
    %c0_i32 = arith.constant 0 : i32
    %c0_i32_0 = arith.constant 0 : i32
    %c0_i32_1 = arith.constant 0 : i32
    return %c0_i32, %c0_i32_0 : i32, i32
  }
  func.func @transform_12(%arg0: i32) -> (i32, i32) {
    %c0_i32 = arith.constant 0 : i32
    %c0_i32_0 = arith.constant 0 : i32
    %c0_i32_1 = arith.constant 0 : i32
    return %c0_i32, %c0_i32_0 : i32, i32
  }
  func.func @transform_13(%arg0: i32) -> (i32, i32) {
    %c0_i32 = arith.constant 0 : i32
    %c0_i32_0 = arith.constant 0 : i32
    %c0_i32_1 = arith.constant 0 : i32
    return %c0_i32, %c0_i32_0 : i32, i32
  }
  func.func @transform_14(%arg0: i32) -> (i32, i32) {
    %c0_i32 = arith.constant 0 : i32
    %c0_i32_0 = arith.constant 0 : i32
    %c0_i32_1 = arith.constant 0 : i32
    return %c0_i32, %c0_i32_0 : i32, i32
  }
  func.func @transform_15(%arg0: i32) -> (i32, i32) {
    %c0_i32 = arith.constant 0 : i32
    %c0_i32_0 = arith.constant 0 : i32
    %c0_i32_1 = arith.constant 0 : i32
    return %c0_i32, %c0_i32_0 : i32, i32
  }
  func.func @transform_16(%arg0: i32) -> (i32, i32) {
    %c0_i32 = arith.constant 0 : i32
    %c0_i32_0 = arith.constant 0 : i32
    %c0_i32_1 = arith.constant 0 : i32
    return %c0_i32, %c0_i32_0 : i32, i32
  }
  func.func @transform_17(%arg0: i32) -> (i32, i32, i32) {
    %c0_i32 = arith.constant 0 : i32
    %c0_i32_0 = arith.constant 0 : i32
    %c0_i32_1 = arith.constant 0 : i32
    return %arg0, %c0_i32, %c0_i32_0 : i32, i32, i32
  }
}

</mosaic_0001>

<bundles_post_ra>
// kernel: tpu_custom_call.1
= control target key start
LH: loop header
LB: loop body
LE: loop exit
PB: predicated region body
PF: predicated region fallthrough
CT: control target
= control target key end

     0   :  { %s2708_s0 = inlined_call_operand.hbm [shape: f32[2,8,32], index: 0, kind: input, shape index: {}]   ;;  %s2709_s1 = inlined_call_operand.hbm [shape: f32[1,32], index: 1, kind: input, shape index: {}]   ;;  %s2710_s2 = inlined_call_operand.vmem [shape: f32[1,32], index: 2, kind: input, shape index: {}]   ;;  %s2711_s3 = inlined_call_operand.vmem [shape: f32[32,32], index: 3, kind: input, shape index: {}]   ;;  %s2712_s4 = inlined_call_operand.vmem [shape: f32[32,32], index: 4, kind: input, shape index: {}]   ;;  %s2713_s5 = inlined_call_operand.vmem [shape: f32[32,32], index: 5, kind: input, shape index: {}]   ;;  %s2714_s6 = inlined_call_operand.vmem [shape: f32[1,32], index: 6, kind: input, shape index: {}]   ;;  %s2715_s7 = inlined_call_operand.vmem [shape: f32[1,32], index: 7, kind: input, shape index: {}]   ;;  %s2716_s8 = inlined_call_operand.vmem [shape: f32[1,32], index: 8, kind: input, shape index: {}]   ;;  %s2717_s9 = inlined_call_operand.hbm [shape: f32[32,32], index: 9, kind: input, shape index: {}]   ;;  %s2718_s10 = inlined_call_operand.vmem [shape: f32[1,32], index: 10, kind: input, shape index: {}]   ;;  %s2719_s11 = inlined_call_operand.vmem [shape: f32[1,32], index: 11, kind: input, shape index: {}]   ;;  %s2720_s12 = inlined_call_operand.vmem [shape: f32[1,32], index: 12, kind: input, shape index: {}]   ;;  %s2721_s13 = inlined_call_operand.hbm [shape: f32[32,64], index: 13, kind: input, shape index: {}]   ;;  %s2722_s14 = inlined_call_operand.vmem [shape: f32[1,64], index: 14, kind: input, shape index: {}]   ;;  %s2723_s15 = inlined_call_operand.vmem [shape: f32[64,32], index: 15, kind: input, shape index: {}]   ;;  %s2724_s16 = inlined_call_operand.vmem [shape: f32[1,32], index: 16, kind: input, shape index: {}]   ;;  %s2725_s17 = inlined_call_operand.hbm [shape: f32[2,8,32], index: 17, kind: output, shape index: {}]  }
   0x1   :  { %2736 = sst [smem:[#allocation21_spill]] %s2708_s0 }
   0x2   :  { %2737 = sst [smem:[#allocation22_spill]] %s2709_s1 }
   0x3   :  { %2738 = sst [smem:[#allocation23_spill]] %s2717_s9 }
   0x4   :  { %2739 = sst [smem:[#allocation24_spill]] %s2721_s13 }
   0x5   :  { %2740 = sst [smem:[#allocation25_spill]] %s2723_s15 }
   0x6   :  { %2741 = sst [smem:[#allocation26_spill]] %s2724_s16 }
   0x7   :  { %2742 = sst [smem:[#allocation27_spill]] %s2725_s17 }
   0x8   :  { %22 = vsyncpa [#allocation3], 0 }
   0x9   :  { %24 = vsyncpa [#allocation3 + $0x1], 0 }
   0xa   :  { %25 = vsyncpa [#allocation6], 0 }
   0xb   :  { %26 = vsyncpa [#allocation9], 0 }
   0xc   :  { %27 = vsyncpa [#allocation4], 0 }
   0xd   :  { %29 = vsyncpa [#allocation4 + $0x1], 0  ;;  %s2223_s24 = smov 0   ;;  %s2225_s25 = smov 0  }
   0xe   :  { %s2227_s26 = smov 0   ;;  %s2229_s27 = smov 0  }
   0xf LB: > { %2743 = sst [smem:[#allocation15_spill]] %s2105_s24  ;;  %s2244_s28 = sadd.s32 4294967295, %s2117_s27   ;;  %s2117_s27 = sphi %s2229_s27, %s2767_s27   ;;  %s2113_s26 = sphi %s2227_s26, %s2769_s26   ;;  %s2109_s25 = sphi %s2225_s25, %s2771_s25   ;;  %s2105_s24 = sphi %s2223_s24, %s2770_s24  }
  0x10   : > { %2744 = sst [smem:[#allocation16_spill]] %s2113_s26  ;;  %s1764_s29 = sadd.s32 4294967294, %s2117_s27  }
  0x11   : > { %p55_p0 = scmp.ne.s32.totalorder %s2109_s25, %s2105_s24  ;;  %p56_p1 = scmp.eq.s32.totalorder %s2244_s28, 0 }
  0x12   : > { %p415_p2 = scmp.eq.s32.totalorder %s2244_s28, 1  ;;  %p421_p3 = scmp.eq.s32.totalorder %s1764_s29, 1 }
  0x13   : > { %p2253_p4 = por %p56_p1, %p55_p0  ;;  %p1765_p5 = scmp.ge.s32.totalorder %s2117_s27, 1 }
  0x14   : > { %p2258_p6 = por %p421_p3, %p55_p0  ;;  %p428_p7 = scmp.lt.s32.totalorder %s2117_s27, 3 }
  0x15   : > { %s2748_s1 = sld [smem:[#allocation22_spill]]  ;;  %s2119_s22 = smov [#allocation5]  }
  0x16   : > { %s2746_s30 = scalar_select %p2258_p6, 1, 0 }
  0x17   : > { %p2266_p8 = pnand %p1765_p5, %p428_p7  ;;  %s442_s23 = sshll.u32 %s2119_s22, 4  ;;  %s443_s23 = int_to_ptr.vmem [resolvable:$true] %s442_s23 }
  0x18   : > { %2747 = sst [smem:[#allocation17_spill]] %s2746_s30  ;;  %s2120_s19 = smov [#allocation7]  }
  0x19   : > { %p1817_p10 = pneg %p2266_p8  ;;  %s2750_s9 = sld [smem:[#allocation23_spill]] }
  0x1a   : > { %s2121_s24 = smov 128   ;;  %s2122_s22 = smov 8  }
  0x1b   : > { %s440_s20 = sshll.u32 %s2748_s1, 4  ;;  %p2278_p11 = pnand %p1817_p10, %p56_p1  ;;  %s441_s20 = int_to_ptr.hbm [resolvable:$true] %s440_s20 }
  0x1c   : > { %s474_s1 = sshll.u32 %s2120_s19, 4  ;;  %s2752_s13 = sld [smem:[#allocation24_spill]]  ;;  %s475_s1 = int_to_ptr.vmem [resolvable:$true] %s474_s1 }
  0x1d   : > { %1820 = dma.hbm_to_vmem [thread:$0]  (!%p2278_p11), %s441_s20, 16, %s443_s23, [#allocation6]  }
  0x1e   : > { %s2123_s19 = smov [#allocation8]   ;;  %s2292_s20 = sadd.s32 1, %s2117_s27  }
  0x1f   : > { %s472_s30 = sshll.u32 %s2750_s9, 4  ;;  %s497_s16 = sshll.u32 %s2123_s19, 4  ;;  %s473_s30 = int_to_ptr.hbm [resolvable:$true] %s472_s30  ;;  %s498_s16 = int_to_ptr.vmem [resolvable:$true] %s497_s16 }
  0x20   : > { %1823 = dma.hbm_to_vmem [thread:$0]  (!%p2278_p11), %s473_s30, 512, %s475_s1, [#allocation6], %s2121_s24, %s2121_s24, %s2122_s22  }
  0x21   : > { %2753 = sst [smem:[#allocation18_spill]] %s2292_s20  ;;  %s39_s23 = ssub.s32 %s2117_s27, %s2292_s20 }
  0x22   : > { %s495_s17 = sshll.u32 %s2752_s13, 4  ;;  %s42_s15 = sadd.s32 1, %s2113_s26  ;;  %s496_s17 = int_to_ptr.hbm [resolvable:$true] %s495_s17 }
  0x23   : > { %1826 = dma.hbm_to_vmem [thread:$0]  (!%p2278_p11), %s496_s17, 512, %s498_s16, [#allocation9], %s2121_s24, %s2121_s24, %s2122_s22  }
  0x24   : > { %p40_p12 = scmp.eq.s32.totalorder %s39_s23, 0  ;;  %p49_p13 = scmp.ne.s32.totalorder %s2113_s26, %s2109_s25 }
  0x25   : > { %p50_p0 = scmp.eq.s32.totalorder %s2117_s27, 0  ;;  %p1838_p5 = scmp.lt.s32.totalorder %s2117_s27, 2 }
  0x26   : > { %s2301_s30 = scalar_select %p40_p12, %s2113_s26, %s42_s15  }
  0x27   : > { %p2305_p3 = por %p415_p2, %p49_p13  ;;  %s520_s1 = sand.u32 1, %s2113_s26  }
  0x28   : > { %2754 = sst [smem:[#allocation19_spill]] %s2301_s30  ;;  %s1771_s29 = sshll.u32 %s2117_s27, 3 }
  0x29   : > { %s2755_s9 = scalar_select %p2305_p3, 1, 0 }
  0x2a   : > { %p51_p7 = por %p50_p0, %p49_p13  ;;  %s1770_s16 = sshll.u32 %s520_s1, 3 }
  0x2b   : > { %2756 = sst [smem:[#allocation20_spill]] %s2755_s9  ;;  %s524_s23 = scalar_lea.vmem [#allocation2], %s1770_s16 }
  0x2c   : > { %s2757_s24 = sld [smem:[#allocation21_spill]]  ;;  %s532_s20 = sshll.u32 %s524_s23, 4  ;;  %s533_s20 = int_to_ptr.vmem [resolvable:$true] %s532_s20 }
  0x2d   : > { %p2315_p10 = pnand %p1838_p5, %p51_p7  ;;  %s521_s30 = scalar_lea.sflag [#allocation3], %s520_s1 }
  0x2f   : > { %p2017_p11 = pneg %p2315_p10 }
  0x32   : > { %s2758_s22 = smov %s2757_s24  ;;  %s528_s19 = scalar_lea.hbm %s2757_s24, %s1771_s29 }
  0x33   : > { %s530_s13 = sshll.u32 %s528_s19, 4  ;;  %s2020_s16 = scalar_lea.hbm %s2758_s22, 16  ;;  %s531_s13 = int_to_ptr.hbm [resolvable:$true] %s530_s13 }
  0x34   : > { %s2013_s9 = sshra.s32 %s531_s13, 4  ;;  %s2014_s9 = int_to_ptr.hbm [resolvable:$true] %s2013_s9 }
  0x35   : > { %s2015_s26 = scalar_lea.hbm %s2014_s9, 8  ;;  %p2021_p0 = scmp.lt.s32.totalorder %s2014_s9, %s2758_s22 }
  0x36   : > { %p2016_p2 = scmp.ne.s32.totalorder %s2014_s9, %s2015_s26  ;;  %p2022_p5 = scmp.lt.s32.totalorder %s2020_s16, %s2015_s26 }
  0x38   : > { %p2018_p12 = pnand %p2017_p11, %p2016_p2  ;;  %p2023_p7 = por %p2022_p5, %p2021_p0 }
  0x3a   : > { %p2019_p13 = pneg %p2018_p12 }
  0x3c   : > { %p2024_p9 = pnand %p2023_p7, %p2019_p13 }
  0x3e   : > { %2027 = shalt.err (!%p2024_p9)
}
  0x3f   : > { %1830 = dma.hbm_to_vmem [thread:$0]  (!%p2315_p10), %s531_s13, 128, %s533_s20, %s521_s30  }
  0x40   : > { %541 = sbr.rel (%p2266_p8) target bundleno = 2025 (0x7e9), region = 88  ;;  %s2332_s1 = sand.u32 (!%p2266_p8), 1, %s2109_s25  }
  0x41   : > { %s1773_s19 = sshll.u32 (!%p2266_p8), %s2332_s1, 3  ;;  %s544_s23 = scalar_lea.sflag (!%p2266_p8), [#allocation3], %s2332_s1 }
  0x42   : > { %s547_s26 = scalar_lea.vmem (!%p2266_p8), [#allocation2], %s1773_s19 }
  0x45   : > { %2088 = dma.done.wait (%p2253_p4), %s544_s23, 128  }
  0x46   : > { %2090 = vsyncadd (%p2253_p4), %s544_s23, 4294967168 }
  0x47   : > { %2092 = dma.done.wait (%p56_p1), [#allocation6], 528  }
  0x48   : > { %2094 = vsyncadd (%p56_p1), [#allocation6], 4294966768 }
  0x49   : > { %2096 = dma.done.wait (%p56_p1), [#allocation9], 512  }
  0x4a   : > { %2098 = vsyncadd (%p56_p1), [#allocation9], 4294966784  ;;  %vm615_vm0 = vcmask 261120   ;;  %v2350_v0 = vld [vmem:[%s547_s26] sm:$0xff]  ;;  %v2124_v2 = vmov 32.0   ;;  %v658_v14 = vld [vmem:[%s2711_s3 + $0x18] sm:$0xff] }
  0x4b   : > { %v616_v1 = vsel %vm615_vm0, %v2350_v0, 0.0  ;;  %1899 = vrcp.f32 %v2124_v2  ;;  %v717_v15 = vld [vmem:[%s2713_s5 + $0x18] sm:$0xff]  ;;  %678 = vmatpush.msra.mxu1 %v658_v14  ;;  %v657_v16 = vld [vmem:[%s2711_s3 + $0x10] sm:$0xff]  ;;  %v656_v18 = vld [vmem:[%s2711_s3 + $0x8] sm:$0xff]  ;;  %s2125_s13 = smov 112   ;;  %s2126_s20 = smov 104  }
  0x4c   : > { %617 = vadd.xlane.f32.xlu0 %v616_v1  ;;  %734 = vmatpush.msra.mxu2 %v717_v15  ;;  %v716_v17 = vld [vmem:[%s2713_s5 + $0x10] sm:$0xff]  ;;  %v715_v19 = vld [vmem:[%s2713_s5 + $0x8] sm:$0xff]  ;;  %v655_v20 = vld [vmem:[%s2711_s3] sm:$0xff]  ;;  %s2127_s30 = smov 120   ;;  %v2128_v49 = vmov 1983009808  }
  0x4d   : > { %679 = vmatpush.msra.mxu1 %v657_v16  ;;  %v714_v21 = vld [vmem:[%s2713_s5] sm:$0xff]  ;;  %v689_v22 = vld [vmem:[%s2712_s4 + $0x18] sm:$0xff]  ;;  %v688_v23 = vld [vmem:[%s2712_s4 + $0x10] sm:$0xff]  ;;  %v759_v50 = vunpack.c.l.s4 %v2128_v49  ;;  %vm754_vm5 = vcmask 1047556   ;;  %v2129_v58 = vmov 1934713408  }
  0x4e   : > { %735 = vmatpush.msra.mxu2 %v716_v17  ;;  %v687_v24 = vld [vmem:[%s2712_s4 + $0x8] sm:$0xff]  ;;  %v686_v27 = vld [vmem:[%s2712_s4] sm:$0xff]  ;;  %v1889_v35 = vld [vmem:[#allocation5] ss:$0 sm:$0xff]  ;;  %v783_v59 = vunpack.c.l.s4 %v2129_v58  ;;  %vm1104_vm6 = vcmask 64512   ;;  %s2130_s29 = smov 24  }
  0x4f   : > { %680 = vmatpush.msra.mxu1 %v656_v18  ;;  %v1890_v38 = vld [vmem:[%s2710_s2] ss:$0 sm:$0xff]  ;;  %v2415_v55 = vunpack.c.0.s8 %v759_v50  ;;  %s2131_s17 = smov 16   ;;  %s2132_s16 = smov 8   ;;  %vm1468_vm7 = vcmask 130048   ;;  %vm1470_vm8 = vcmask 195584  }
  0x50   : > { %736 = vmatpush.msra.mxu2 %v715_v19  ;;  %v1891_v41 = vld [vmem:[%s2714_s6] ss:$0 sm:$0xff]  ;;  %s2760_s15 = sld [smem:[#allocation25_spill]] }
  0x51   : > { %v1900_v3 = vpop.eup %1899  ;;  %681 = vmatpush.msra.mxu1 %v655_v20  ;;  %v1893_v45 = vld [vmem:[%s2715_s7] ss:$0 sm:$0xff]  ;;  %s2761_s24 = sld [smem:[#allocation26_spill]] }
  0x52   : > { %v620_v4 = vmul.f32 32.0, %v1900_v3  ;;  %vm624_vm1 = vweird.f32 %v1900_v3  ;;  %737 = vmatpush.msra.mxu2 %v714_v21 }
  0x53   : > { %706 = vmatpush.msrb.mxu1 %v689_v22 }
  0x54   : > { %v621_v5 = vsub.f32 1.0, %v620_v4 }
  0x55   : > { %707 = vmatpush.msrb.mxu1 %v688_v23 }
  0x56   : > { %v622_v6 = vmul.f32 %v1900_v3, %v621_v5 }
  0x57   : > { %708 = vmatpush.msrb.mxu1 %v687_v24 }
  0x58   : > { %v623_v7 = vadd.f32 %v1900_v3, %v622_v6 }
  0x59   : > { %709 = vmatpush.msrb.mxu1 %v686_v27 }
  0x5a   : > { %v2354_v8 = vsel %vm624_vm1, %v1900_v3, %v623_v7  ;;  %v2420_v3 = vunpack.c.0.s8 %v783_v59  ;;  %vm1623_vm1 = vcmask 523264  }
  0xbf   : > { %v618_v9 = vpop.xlane.xlu0 %617 }
  0xc0   : > { %v626_v10 = vmul.f32 %v2354_v8, %v618_v9 }
  0xc2   : > { %v627_v11 = vsub.f32 %v2350_v0, %v626_v10 }
  0xc4   : > { %v628_v12 = vmul.f32 %v627_v11, %v627_v11 }
  0xc6   : > { %v629_v13 = vsel %vm615_vm0, %v628_v12, 0.0 }
  0xc7   : > { %630 = vadd.xlane.f32.xlu0 %v629_v13 }
 0x13a   : > { %v631_v25 = vpop.xlane.xlu0 %630 }
 0x13b   : > { %v632_v26 = vmul.f32 %v631_v25, %v2354_v8 }
 0x13d   : > { %v633_v28 = vadd.f32 1e-06, %v632_v26 }
 0x13f   : > { %1901 = vrsqrt.f32 %v633_v28  ;;  %vm640_vm3 = vweird.f32 %v633_v28 }
 0x145   : > { %v1902_v29 = vpop.eup %1901 }
 0x146   : > { %v635_v30 = vmul.f32 %v1902_v29, %v633_v28  ;;  %vm641_vm2 = vweird.f32 %v1902_v29 }
 0x147   : > { %vm642_vm4 = vmor %vm640_vm3, %vm641_vm2 }
 0x148   : > { %v636_v31 = vmul.f32 %v1902_v29, %v635_v30 }
 0x14a   : > { %v637_v32 = vmul.f32 0.5, %v636_v31 }
 0x14c   : > { %v638_v33 = vsub.f32 1.5, %v637_v32 }
 0x14e   : > { %v639_v34 = vmul.f32 %v1902_v29, %v638_v33 }
 0x150   : > { %v643_v36 = vsel %vm642_vm4, %v1902_v29, %v639_v34 }
 0x151   : > { %v644_v37 = vmul.f32 %v643_v36, %v627_v11 }
 0x153   : > { %v649_v39 = vmul.f32 %v1889_v35, %v644_v37 }
 0x155   : > { %v654_v40 = vadd.f32 %v1890_v38, %v649_v39 }
 0x157   : > { %1778 = vmatmul.msk.f32.vlgmr.msra.gmra.mxu1 %vm615_vm0, %v654_v40  ;;  %1780 = vmatmul.msk.f32.vlgmr.msra.gmra.mxu2 %vm615_vm0, %v654_v40 }
 0x15f   : > { %1779 = vmatmul.msk.f32.vlgmr.msrb.gmra.mxu1 %vm615_vm0, %v654_v40 }
 0x1d4   : > { %v683_v42 = vpop.f32.mrf.mxu1 }
 0x1d5   : > { %v684_v43 = vadd.f32 %v1891_v41, %v683_v42 }
 0x1d7   : > { %v742_v44 = vmul.f32 0.35355338, %v684_v43 }
 0x1d9   : > { %747 = vrot.lane.b32.xlu0 %v742_v44, %s2125_s13  ;;  %v756_v63 = vrot.slane %v742_v44, 4 }
 0x1dc   : > { %v711_v46 = vpop.f32.mrf.mxu1 }
 0x1dd   : > { %v712_v47 = vadd.f32 %v1893_v45, %v711_v46 }
 0x1df   : > { %871 = vrot.lane.b32.xlu2 %v712_v47, %s2126_s20  ;;  %865 = vrot.lane.b32.xlu1 %v712_v47, %s2127_s30  ;;  %v876_v62 = vrot.slane %v712_v47, 4 }
 0x1e7   : > { %868 = vrot.lane.b32.xlu1 %v712_v47, %s2125_s13  ;;  %744 = vrot.lane.b32.xlu2 %v742_v44, %s2127_s30 }
 0x1ef   : > { %750 = vrot.lane.b32.xlu1 %v742_v44, %s2126_s20 }
 0x239   : > { %v872_v48 = vpop.permute.xlu2 %871 }
 0x23a   : > { %v886_v53 = vrot.slane %v872_v48, 4 }
 0x241   : > { %v745_v16 = vpop.permute.xlu2 %744 }
 0x242   : > { %v768_v26 = vrot.slane %v745_v16, 4 }
 0x24b   : > { %v748_v56 = vpop.permute.xlu0 %747 }
 0x24c   : > { %v753_v61 = vrot.slane %v748_v56, 4  ;;  %v757_v6 = vsel %vm754_vm5, %v748_v56, %v756_v63 }
 0x24d   : > { %v765_v17 = vperm.slane %v757_v6, %v2415_v55 }
 0x24e   : > { %v755_v10 = vsel %vm754_vm5, %v753_v61, %v742_v44 }
 0x24f   : > { %v761_v19 = vperm.slane %v755_v10, %v2415_v55  ;;  %v792_v29 = vrot.slane %v765_v17, 4 }
 0x251   : > { %v866_v51 = vpop.permute.xlu1 %865  ;;  %v780_v33 = vrot.slane %v761_v19, 4 }
 0x252   : > { %v888_v52 = vrot.slane %v866_v51, 4  ;;  %v887_v57 = vsel %vm754_vm5, %v886_v53, %v866_v51 }
 0x253   : > { %v893_v1 = vperm.slane %v887_v57, %v2415_v55 }
 0x254   : > { %v889_v54 = vsel %vm754_vm5, %v872_v48, %v888_v52 }
 0x255   : > { %v897_v60 = vperm.slane %v889_v54, %v2415_v55  ;;  %v898_v12 = vrot.slane %v893_v1, 4 }
 0x257   : > { %v910_v7 = vrot.slane %v897_v60, 4 }
 0x259   : > { %v869_v2 = vpop.permute.xlu1 %868 }
 0x25a   : > { %v874_v4 = vrot.slane %v869_v2, 4  ;;  %v877_v5 = vsel %vm754_vm5, %v869_v2, %v876_v62 }
 0x25b   : > { %v885_v9 = vperm.slane %v877_v5, %v2415_v55 }
 0x25c   : > { %v875_v11 = vsel %vm754_vm5, %v874_v4, %v712_v47 }
 0x25d   : > { %v881_v13 = vperm.slane %v875_v11, %v2415_v55  ;;  %v911_v14 = vsel %vm754_vm5, %v910_v7, %v885_v9  ;;  %v912_v15 = vrot.slane %v885_v9, 4 }
 0x25e   : > { %v917_v18 = vperm.slane %v911_v14, %v2420_v3 }
 0x25f   : > { %v899_v20 = vsel %vm754_vm5, %v898_v12, %v881_v13  ;;  %v900_v21 = vrot.slane %v881_v13, 4  ;;  %v913_v22 = vsel %vm754_vm5, %v897_v60, %v912_v15 }
 0x260   : > { %v905_v23 = vperm.slane %v899_v20, %v2420_v3  ;;  %v921_v24 = vperm.slane %v913_v22, %v2420_v3  ;;  %v926_v25 = vrot.slane %v917_v18, 4 }
 0x261   : > { %v901_v27 = vsel %vm754_vm5, %v893_v1, %v900_v21  ;;  %v751_v28 = vpop.permute.xlu1 %750 }
 0x262   : > { %v909_v30 = vperm.slane %v901_v27, %v2420_v3  ;;  %v922_v31 = vrot.slane %v905_v23, 4  ;;  %v928_v32 = vrot.slane %v921_v24, 4  ;;  %v927_v34 = vsel %vm754_vm5, 0.0, %v926_v25 }
 0x263   : > { %v766_v35 = vrot.slane %v751_v28, 4  ;;  %v769_v36 = vsel %vm754_vm5, %v751_v28, %v768_v26 }
 0x264   : > { %v924_v37 = vrot.slane %v909_v30, 4  ;;  %v929_v38 = vsel %vm754_vm5, 0.0, %v928_v32  ;;  %v941_v39 = vsel %vm754_vm5, %v928_v32, %v917_v18  ;;  %v777_v40 = vperm.slane %v769_v36, %v2415_v55 }
 0x265   : > { %v945_v41 = vperm.slane %v941_v39, %v2415_v55  ;;  %v946_v42 = vrot.slane %v929_v38, 4  ;;  %v767_v43 = vsel %vm754_vm5, %v766_v35, %v745_v16  ;;  %v923_v44 = vsel %vm754_vm5, 0.0, %v922_v31 }
 0x266   : > { %v773_v45 = vperm.slane %v767_v43, %v2415_v55  ;;  %v790_v46 = vrot.slane %v777_v40, 4  ;;  %v793_v47 = vsel %vm754_vm5, %v777_v40, %v792_v29  ;;  %v925_v48 = vsel %vm754_vm5, 0.0, %v924_v37 }
 0x267   : > { %v801_v49 = vperm.slane %v793_v47, %v2420_v3  ;;  %v930_v50 = vsel %vm754_vm5, %v924_v37, %v905_v23  ;;  %v935_v51 = vrot.slane %v925_v48, 4  ;;  %v947_v52 = vsel %vm754_vm5, %v946_v42, %v927_v34 }
 0x268   : > { %v778_v53 = vrot.slane %v773_v45, 4  ;;  %v781_v54 = vsel %vm754_vm5, %v773_v45, %v780_v33  ;;  %v791_v56 = vsel %vm754_vm5, %v790_v46, %v765_v17  ;;  %v934_v57 = vperm.slane %v930_v50, %v2415_v55 }
 0x269   : > { %v789_v58 = vperm.slane %v781_v54, %v2420_v3  ;;  %v797_v59 = vperm.slane %v791_v56, %v2420_v3  ;;  %v808_v60 = vrot.slane %v801_v49, 4  ;;  %v936_v61 = vsel %vm754_vm5, %v935_v51, %v923_v44 }
 0x26a   : > { %v779_v62 = vsel %vm754_vm5, %v778_v53, %v761_v19  ;;  %v940_v63 = vperm.slane %v936_v61, %v2415_v55  ;;  %v951_v1 = vperm.slane %v947_v52, %v2415_v55  ;;  %v954_v2 = vrot.slane %v934_v57, 4 }
 0x26b   : > { %v785_v4 = vperm.slane %v779_v62, %v2420_v3  ;;  %v804_v5 = vrot.slane %v789_v58, 4  ;;  %v806_v6 = vrot.slane %v797_v59, 4  ;;  %v809_v7 = vsel %vm754_vm5, 0.0, %v808_v60 }
 0x26c   : > { %v821_v9 = vsel %vm754_vm5, %v808_v60, %v797_v59  ;;  %v826_v10 = vrot.slane %v809_v7, 4  ;;  %v955_v11 = vsel %vm754_vm5, %v940_v63, %v954_v2  ;;  %v966_v12 = vrot.slane %v945_v41, 4  ;;  %v1892_v7 = vld [vmem:[%s2716_s8] ss:$0 sm:$0xff] }
 0x26d   : > { %v802_v13 = vrot.slane %v785_v4, 4  ;;  %v805_v14 = vsel %vm754_vm5, 0.0, %v804_v5  ;;  %v807_v15 = vsel %vm754_vm5, 0.0, %v806_v6  ;;  %v825_v16 = vperm.slane %v821_v9, %v2415_v55 }
 0x26e   : > { %v815_v17 = vrot.slane %v805_v14, 4  ;;  %v963_v18 = vperm.slane %v955_v11, %v2420_v3  ;;  %v967_v19 = vsel %vm754_vm5, %v951_v1, %v966_v12  ;;  %v952_v20 = vrot.slane %v940_v63, 4 }
 0x26f   : > { %v975_v21 = vperm.slane %v967_v19, %v2420_v3  ;;  %v964_v22 = vrot.slane %v951_v1, 4  ;;  %v803_v23 = vsel %vm754_vm5, 0.0, %v802_v13  ;;  %v810_v24 = vsel %vm754_vm5, %v804_v5, %v785_v4 }
 0x270   : > { %v982_v25 = vrot.slane %v963_v18, 4  ;;  %v953_v26 = vsel %vm754_vm5, %v952_v20, %v934_v57  ;;  %v814_v27 = vperm.slane %v810_v24, %v2415_v55  ;;  %v816_v28 = vsel %vm754_vm5, %v815_v17, %v803_v23 }
 0x271   : > { %v980_v29 = vrot.slane %v975_v21, 4  ;;  %v959_v30 = vperm.slane %v953_v26, %v2420_v3  ;;  %v965_v31 = vsel %vm754_vm5, %v964_v22, %v945_v41  ;;  %v820_v32 = vperm.slane %v816_v28, %v2415_v55 }
 0x272   : > { %v971_v33 = vperm.slane %v965_v31, %v2420_v3  ;;  %v983_v34 = vsel %vm754_vm5, %v975_v21, %v982_v25  ;;  %v827_v35 = vsel %vm754_vm5, %v826_v10, %v807_v15  ;;  %v834_v36 = vrot.slane %v814_v27, 4  ;;  %v739_v10 = vpop.f32.mrf.mxu2 }
 0x273   : > { %v981_v37 = vsel %vm754_vm5, %v980_v29, %v963_v18  ;;  %1787 = vmatpush.xpose.msk.msra.mxu1 %vm1104_vm6, %v983_v34  ;;  %v978_v38 = vrot.slane %v959_v30, 4  ;;  %v831_v39 = vperm.slane %v827_v35, %v2415_v55  ;;  %v846_v40 = vrot.slane %v825_v16, 4 }
 0x274   : > { %1785 = vmatpush.xpose.msk.msra.mxu0 %vm1104_vm6, %v981_v37  ;;  %v976_v41 = vrot.slane %v971_v33, 4  ;;  %v835_v42 = vsel %vm754_vm5, %v820_v32, %v834_v36  ;;  %v832_v43 = vrot.slane %v820_v32, 4  ;;  %v740_v12 = vadd.f32 %v1892_v7, %v739_v10 }
 0x275   : > { %v979_v44 = vsel %vm754_vm5, %v971_v33, %v978_v38  ;;  %v843_v45 = vperm.slane %v835_v42, %v2420_v3  ;;  %v847_v46 = vsel %vm754_vm5, %v831_v39, %v846_v40  ;;  %v844_v47 = vrot.slane %v831_v39, 4 }
 0x276   : > { %v977_v48 = vsel %vm754_vm5, %v976_v41, %v959_v30  ;;  %v855_v49 = vperm.slane %v847_v46, %v2420_v3  ;;  %v833_v50 = vsel %vm754_vm5, %v832_v43, %v814_v27  ;;  %v996_v40 = vrot.slane %v740_v12, 4 }
 0x277   : > { %1781 = vmatpush.xpose.msk.msra.mxu3 %vm1104_vm6, %v977_v48  ;;  %v862_v51 = vrot.slane %v843_v45, 4  ;;  %v845_v52 = vsel %vm754_vm5, %v844_v47, %v825_v16  ;;  %v839_v54 = vperm.slane %v833_v50, %v2420_v3 }
 0x278   : > { %v860_v53 = vrot.slane %v855_v49, 4  ;;  %v851_v56 = vperm.slane %v845_v52, %v2420_v3 }
 0x279   : > { %v863_v57 = vsel %vm754_vm5, %v855_v49, %v862_v51  ;;  %v858_v61 = vrot.slane %v839_v54, 4 }
 0x27a   : > { %v861_v58 = vsel %vm754_vm5, %v860_v53, %v843_v45  ;;  %v856_v59 = vrot.slane %v851_v56, 4  ;;  %1788 = vmatmul.msk.f32.vlgmr.msra.gmra.mxu1 %vm1104_vm6, %v863_v57 }
 0x27b   : > { %1783 = vmatpush.xpose.msk.msrb.mxu3 %vm1104_vm6, %v979_v44  ;;  %1786 = vmatmul.msk.f32.vlgmr.msra.gmra.mxu0 %vm1104_vm6, %v861_v58  ;;  %v859_v62 = vsel %vm754_vm5, %v851_v56, %v858_v61 }
 0x27c   : > { %v857_v60 = vsel %vm754_vm5, %v856_v59, %v839_v54 }
 0x27d   : > { %1782 = vmatmul.msk.f32.vlgmr.msra.gmra.mxu3 %vm1104_vm6, %v857_v60 }
 0x285   : > { %1784 = vmatmul.msk.f32.vlgmr.msrb.gmra.mxu3 %vm1104_vm6, %v859_v62 }
 0x2f7   : > { %v1206_v63 = vpop.f32.mrf.mxu1 }
 0x2f8   : > { %v1180_v1 = vpop.f32.mrf.mxu0  ;;  %v1218_v2 = vsel %vm1104_vm6, %v1206_v63, -inf }
 0x2f9   : > { %v1215_v4 = vsel %vm1104_vm6, %v1180_v1, -inf  ;;  %1219 = vmax.xlane.f32.xlu2 %v1218_v2 }
 0x2fa   : > { %1216 = vmax.xlane.f32.xlu0 %v1215_v4 }
 0x300   : > { %v1128_v5 = vpop.f32.mrf.mxu3 }
 0x301   : > { %v1209_v6 = vsel %vm1104_vm6, %v1128_v5, -inf }
 0x302   : > { %1210 = vmax.xlane.f32.xlu2 %v1209_v6 }
 0x308   : > { %v1154_v9 = vpop.f32.mrf.mxu3 }
 0x309   : > { %v1212_v11 = vsel %vm1104_vm6, %v1154_v9, -inf }
 0x30a   : > { %1213 = vmax.xlane.f32.xlu1 %v1212_v11 }
 0x30e   : > { %991 = vrot.lane.b32.xlu0 %v740_v12, %s2126_s20  ;;  %s613_s20 = scalar_lea.vmem [#allocation10], %s1773_s19 }
 0x31a   : > { %985 = vrot.lane.b32.xlu2 %v740_v12, %s2127_s30  ;;  %s1662_s30 = sshll.u32 %s613_s20, 4  ;;  %s1663_s30 = int_to_ptr.vmem [resolvable:$true] %s1662_s30 }
 0x323   : > { %988 = vrot.lane.b32.xlu1 %v740_v12, %s2125_s13  ;;  %s2762_s13 = sld [smem:[#allocation27_spill]] }
 0x329   : > { %s2063_s19 = scalar_lea.hbm %s2762_s13, 16 }
 0x36c   : > { %v1220_v13 = vpop.xlane.xlu2 %1219 }
 0x36d   : > { %v1217_v14 = vpop.xlane.xlu0 %1216  ;;  %v1224_v20 = vsub.f32 %v1206_v63, %v1220_v13 }
 0x36e   : > { %v1223_v15 = vsub.f32 %v1180_v1, %v1217_v14 }
 0x36f   : > { %v1231_v23 = vmul.f32 1.442695, %v1224_v20 }
 0x370   : > { %v1229_v16 = vmul.f32 1.442695, %v1223_v15 }
 0x372   : > { %1903 = vpow2.f32 %v1229_v16 }
 0x375   : > { %v1211_v17 = vpop.xlane.xlu2 %1210 }
 0x376   : > { %v1221_v18 = vsub.f32 %v1128_v5, %v1211_v17 }
 0x378   : > { %v2516_v19 = vpop.eup %1903  ;;  %v1225_v21 = vmul.f32 1.442695, %v1221_v18 }
 0x379   : > { %v1239_v22 = vsel %vm1104_vm6, %v2516_v19, 0.0 }
 0x37a   : > { %1905 = vpow2.f32 %v1225_v21  ;;  %1240 = vadd.xlane.f32.xlu0 %v1239_v22 }
 0x37b   : > { %1907 = vpow2.f32 %v1231_v23 }
 0x37d   : > { %v1214_v24 = vpop.xlane.xlu1 %1213  ;;  %v986_v31 = vpop.permute.xlu2 %985 }
 0x37e   : > { %v1222_v25 = vsub.f32 %v1154_v9, %v1214_v24  ;;  %v1008_v35 = vrot.slane %v986_v31, 4 }
 0x380   : > { %v2520_v26 = vpop.eup %1905  ;;  %v1227_v27 = vmul.f32 1.442695, %v1222_v25  ;;  %v992_v34 = vpop.permute.xlu0 %991 }
 0x381   : > { %v1233_v28 = vsel %vm1104_vm6, %v2520_v26, 0.0  ;;  %v2524_v29 = vpop.eup %1907  ;;  %v1006_v36 = vrot.slane %v992_v34, 4  ;;  %v1009_v37 = vsel %vm754_vm5, %v992_v34, %v1008_v35 }
 0x382   : > { %1909 = vpow2.f32 %v1227_v27  ;;  %1234 = vadd.xlane.f32.xlu2 %v1233_v28  ;;  %v1242_v33 = vsel %vm1104_vm6, %v2524_v29, 0.0  ;;  %v1017_v39 = vperm.slane %v1009_v37, %v2415_v55 }
 0x383   : > { %v1007_v38 = vsel %vm754_vm5, %v1006_v36, %v986_v31 }
 0x384   : > { %v1013_v41 = vperm.slane %v1007_v38, %v2415_v55  ;;  %v1030_v45 = vrot.slane %v1017_v39, 4 }
 0x386   : > { %v1018_v48 = vrot.slane %v1013_v41, 4 }
 0x388   : > { %v2526_v30 = vpop.eup %1909 }
 0x389   : > { %v1236_v32 = vsel %vm1104_vm6, %v2526_v30, 0.0 }
 0x38a   : > { %1237 = vadd.xlane.f32.xlu1 %v1236_v32  ;;  %1243 = vadd.xlane.f32.xlu2 %v1242_v33 }
 0x395   : > { %v989_v42 = vpop.permute.xlu1 %988 }
 0x396   : > { %v994_v43 = vrot.slane %v989_v42, 4  ;;  %v997_v44 = vsel %vm754_vm5, %v989_v42, %v996_v40 }
 0x397   : > { %v1005_v46 = vperm.slane %v997_v44, %v2415_v55 }
 0x398   : > { %v995_v47 = vsel %vm754_vm5, %v994_v43, %v740_v12 }
 0x399   : > { %v1001_v49 = vperm.slane %v995_v47, %v2415_v55  ;;  %v1031_v50 = vsel %vm754_vm5, %v1030_v45, %v1005_v46  ;;  %v1032_v51 = vrot.slane %v1005_v46, 4 }
 0x39a   : > { %v1037_v52 = vperm.slane %v1031_v50, %v2420_v3 }
 0x39b   : > { %v1019_v53 = vsel %vm754_vm5, %v1018_v48, %v1001_v49  ;;  %v1020_v54 = vrot.slane %v1001_v49, 4  ;;  %v1033_v56 = vsel %vm754_vm5, %v1017_v39, %v1032_v51 }
 0x39c   : > { %v1025_v57 = vperm.slane %v1019_v53, %v2420_v3  ;;  %v1041_v58 = vperm.slane %v1033_v56, %v2420_v3  ;;  %v1046_v61 = vrot.slane %v1037_v52, 4 }
 0x39d   : > { %v1021_v59 = vsel %vm754_vm5, %v1013_v41, %v1020_v54 }
 0x39e   : > { %v1029_v60 = vperm.slane %v1021_v59, %v2420_v3  ;;  %v1048_v62 = vrot.slane %v1041_v58, 4  ;;  %v1042_v63 = vrot.slane %v1025_v57, 4  ;;  %v1047_v7 = vsel %vm754_vm5, 0.0, %v1046_v61 }
 0x3a0   : > { %v1044_v1 = vrot.slane %v1029_v60, 4  ;;  %v1049_v2 = vsel %vm754_vm5, 0.0, %v1048_v62  ;;  %v1061_v4 = vsel %vm754_vm5, %v1048_v62, %v1037_v52  ;;  %v1043_v15 = vsel %vm754_vm5, 0.0, %v1042_v63 }
 0x3a1   : > { %v1065_v5 = vperm.slane %v1061_v4, %v2415_v55  ;;  %v1066_v6 = vrot.slane %v1049_v2, 4 }
 0x3a2   : > { %v1045_v9 = vsel %vm754_vm5, 0.0, %v1044_v1  ;;  %v1050_v10 = vsel %vm754_vm5, %v1044_v1, %v1025_v57 }
 0x3a3   : > { %v1054_v11 = vperm.slane %v1050_v10, %v2415_v55  ;;  %v1055_v12 = vrot.slane %v1045_v9, 4  ;;  %v1067_v13 = vsel %vm754_vm5, %v1066_v6, %v1047_v7  ;;  %v1086_v14 = vrot.slane %v1065_v5, 4 }
 0x3a4   : > { %v1071_v16 = vperm.slane %v1067_v13, %v2415_v55 }
 0x3a5   : > { %v1056_v17 = vsel %vm754_vm5, %v1055_v12, %v1043_v15  ;;  %v1074_v18 = vrot.slane %v1054_v11, 4 }
 0x3a6   : > { %v1060_v20 = vperm.slane %v1056_v17, %v2415_v55  ;;  %v1087_v21 = vsel %vm754_vm5, %v1071_v16, %v1086_v14  ;;  %v1084_v22 = vrot.slane %v1071_v16, 4 }
 0x3a7   : > { %v1095_v23 = vperm.slane %v1087_v21, %v2420_v3 }
 0x3a8   : > { %v1075_v24 = vsel %vm754_vm5, %v1060_v20, %v1074_v18  ;;  %v1072_v25 = vrot.slane %v1060_v20, 4  ;;  %v1085_v27 = vsel %vm754_vm5, %v1084_v22, %v1065_v5 }
 0x3a9   : > { %v1083_v28 = vperm.slane %v1075_v24, %v2420_v3  ;;  %v1100_v31 = vrot.slane %v1095_v23, 4  ;;  %v1091_v32 = vperm.slane %v1085_v27, %v2420_v3 }
 0x3aa   : > { %v1073_v33 = vsel %vm754_vm5, %v1072_v25, %v1054_v11 }
 0x3ab   : > { %v1101_v34 = vsel %vm754_vm5, %v1100_v31, %v1083_v28  ;;  %v1102_v35 = vrot.slane %v1083_v28, 4  ;;  %v1079_v36 = vperm.slane %v1073_v33, %v2420_v3  ;;  %v1096_v37 = vrot.slane %v1091_v32, 4 }
 0x3ac   : > { %1317 = vmatpush.msrb.mxu0 %v1101_v34 }
 0x3ad   : > { %v1097_v38 = vsel %vm754_vm5, %v1096_v37, %v1079_v36  ;;  %v1098_v39 = vrot.slane %v1079_v36, 4  ;;  %v1103_v40 = vsel %vm754_vm5, %v1095_v23, %v1102_v35 }
 0x3ae   : > { %1271 = vmatpush.msrb.mxu2 %v1097_v38  ;;  %1340 = vmatpush.msrb.mxu1 %v1103_v40 }
 0x3af   : > { %v1099_v41 = vsel %vm754_vm5, %v1091_v32, %v1098_v39 }
 0x3b0   : > { %1294 = vmatpush.msra.mxu3 %v1099_v41 }
 0x3ed   : > { %v1241_v42 = vpop.xlane.xlu0 %1240 }
 0x3ee   : > { %1911 = vrcp.f32 %v1241_v42 }
 0x3f4   : > { %v1912_v43 = vpop.eup %1911 }
 0x3f5   : > { %v1235_v44 = vpop.xlane.xlu2 %1234  ;;  %v1251_v45 = vmul.f32 %v1912_v43, %v2516_v19 }
 0x3f6   : > { %1913 = vrcp.f32 %v1235_v44 }
 0x3f7   : > { %1791 = vmatmul.msk.f32.vlgmr.msrb.gmra.mxu0 %vm1104_vm6, %v1251_v45 }
 0x3fc   : > { %v1914_v46 = vpop.eup %1913 }
 0x3fd   : > { %v1238_v47 = vpop.xlane.xlu1 %1237  ;;  %v1244_v48 = vpop.xlane.xlu2 %1243  ;;  %v1249_v49 = vmul.f32 %v1914_v46, %v2520_v26 }
 0x3fe   : > { %1915 = vrcp.f32 %v1238_v47 }
 0x3ff   : > { %1917 = vrcp.f32 %v1244_v48  ;;  %1789 = vmatmul.msk.f32.vlgmr.msrb.gmra.mxu2 %vm1104_vm6, %v1249_v49 }
 0x404   : > { %v1916_v50 = vpop.eup %1915 }
 0x405   : > { %v1918_v51 = vpop.eup %1917  ;;  %v1250_v52 = vmul.f32 %v1916_v50, %v2526_v30 }
 0x406   : > { %v1252_v53 = vmul.f32 %v1918_v51, %v2524_v29 }
 0x407   : > { %1790 = vmatmul.msk.f32.vlgmr.msra.gmra.mxu3 %vm1104_vm6, %v1250_v52 }
 0x408   : > { %1792 = vmatmul.msk.f32.vlgmr.msrb.gmra.mxu1 %vm1104_vm6, %v1252_v53 }
 0x474   : > { %v1319_v19 = vpop.f32.mrf.mxu0 }
 0x475   : > { %v1345_v56 = vrot.slane %v1319_v19, 4 }
 0x482   : > { %v1273_v54 = vpop.f32.mrf.mxu2 }
 0x483   : > { %v1347_v57 = vrot.slane %v1273_v54, 4  ;;  %v1346_v26 = vsel %vm754_vm5, %v1345_v56, %v1273_v54 }
 0x484   : > { %v1352_v60 = vperm.slane %v1346_v26, %v2415_v55 }
 0x485   : > { %v1342_v58 = vpop.f32.mrf.mxu1  ;;  %v1348_v59 = vsel %vm754_vm5, %v1319_v19, %v1347_v57 }
 0x486   : > { %v1357_v61 = vrot.slane %v1342_v58, 4  ;;  %v1356_v30 = vperm.slane %v1348_v59, %v2415_v55  ;;  %v1371_v1 = vrot.slane %v1352_v60, 4  ;;  %v1474_v59 = vld [vmem:[#allocation7 + $0x10] sm:$0xff] }
 0x488   : > { %v1383_v5 = vrot.slane %v1356_v30, 4 }
 0x48a   : > { %v1296_v62 = vpop.f32.mrf.mxu3 }
 0x48b   : > { %v1358_v29 = vsel %vm754_vm5, %v1357_v61, %v1296_v62  ;;  %v1359_v63 = vrot.slane %v1296_v62, 4 }
 0x48c   : > { %v1364_v2 = vperm.slane %v1358_v29, %v2415_v55 }
 0x48d   : > { %v1360_v4 = vsel %vm754_vm5, %v1342_v58, %v1359_v63  ;;  %v1475_v58 = vld [vmem:[#allocation7 + $0x18] sm:$0xff] }
 0x48e   : > { %v1368_v6 = vperm.slane %v1360_v4, %v2415_v55  ;;  %v1369_v7 = vrot.slane %v1364_v2, 4  ;;  %v1372_v9 = vsel %vm754_vm5, %v1364_v2, %v1371_v1  ;;  %1495 = vmatpush.msra.mxu2 %v1475_v58  ;;  %v1894_v2 = vld [vmem:[%s2718_s10] ss:$0 sm:$0xff] }
 0x48f   : > { %v1380_v10 = vperm.slane %v1372_v9, %v2420_v3 }
 0x490   : > { %v1370_v11 = vsel %vm754_vm5, %v1369_v7, %v1352_v60  ;;  %v1381_v12 = vrot.slane %v1368_v6, 4  ;;  %v1384_v13 = vsel %vm754_vm5, %v1368_v6, %v1383_v5  ;;  %1496 = vmatpush.msra.mxu2 %v1474_v59  ;;  %v1473_v60 = vld [vmem:[#allocation7 + $0x8] sm:$0xff] }
 0x491   : > { %v1376_v14 = vperm.slane %v1370_v11, %v2420_v3  ;;  %v1392_v15 = vperm.slane %v1384_v13, %v2420_v3  ;;  %v1395_v16 = vrot.slane %v1380_v10, 4 }
 0x492   : > { %v1382_v17 = vsel %vm754_vm5, %v1381_v12, %v1356_v30  ;;  %1497 = vmatpush.msra.mxu2 %v1473_v60 }
 0x493   : > { %v1388_v18 = vperm.slane %v1382_v17, %v2420_v3  ;;  %v1393_v20 = vrot.slane %v1376_v14, 4  ;;  %v1396_v21 = vsel %vm754_vm5, 0.0, %v1395_v16  ;;  %v1399_v22 = vrot.slane %v1392_v15, 4  ;;  %v1538_v15 = vld [vmem:[#allocation8 + $0x10] sm:$0xff] }
 0x494   : > { %v1401_v23 = vsel %vm754_vm5, %v1395_v16, %v1376_v14  ;;  %v1406_v24 = vrot.slane %v1396_v21, 4  ;;  %v1539_v14 = vld [vmem:[#allocation8 + $0x18] sm:$0xff]  ;;  %v1537_v16 = vld [vmem:[#allocation8 + $0x8] sm:$0xff] }
 0x495   : > { %v1394_v25 = vsel %vm754_vm5, 0.0, %v1393_v20  ;;  %v1397_v27 = vrot.slane %v1388_v18, 4  ;;  %v1400_v28 = vsel %vm754_vm5, 0.0, %v1399_v22  ;;  %v1405_v31 = vperm.slane %v1401_v23, %v2415_v55  ;;  %1559 = vmatpush.msrb.mxu3 %v1539_v14 }
 0x496   : > { %v1417_v32 = vrot.slane %v1400_v28, 4  ;;  %v1407_v33 = vsel %vm754_vm5, %v1406_v24, %v1394_v25  ;;  %v1412_v34 = vsel %vm754_vm5, %v1399_v22, %v1388_v18  ;;  %v1895_v28 = vld [vmem:[%s2719_s11] ss:$0 sm:$0xff] }
 0x497   : > { %v1398_v35 = vsel %vm754_vm5, 0.0, %v1397_v27  ;;  %v1411_v36 = vperm.slane %v1407_v33, %v2415_v55  ;;  %v1416_v37 = vperm.slane %v1412_v34, %v2415_v55  ;;  %v1425_v38 = vrot.slane %v1405_v31, 4  ;;  %1560 = vmatpush.msrb.mxu3 %v1538_v15 }
 0x498   : > { %v1418_v39 = vsel %vm754_vm5, %v1417_v32, %v1398_v35  ;;  %v1897_v35 = vld [vmem:[%s2722_s14] ss:$0 sm:$0xff] }
 0x499   : > { %v1422_v40 = vperm.slane %v1418_v39, %v2415_v55  ;;  %v1426_v41 = vsel %vm754_vm5, %v1411_v36, %v1425_v38  ;;  %v1437_v42 = vrot.slane %v1416_v37, 4  ;;  %v1423_v43 = vrot.slane %v1411_v36, 4  ;;  %1561 = vmatpush.msrb.mxu3 %v1537_v16 }
 0x49a   : > { %v1434_v44 = vperm.slane %v1426_v41, %v2420_v3  ;;  %v1618_v41 = vld [vmem:[%s2760_s15 + $0x38] sm:$0xff] }
 0x49b   : > { %v1438_v45 = vsel %vm754_vm5, %v1422_v40, %v1437_v42  ;;  %v1424_v46 = vsel %vm754_vm5, %v1423_v43, %v1405_v31  ;;  %v1435_v47 = vrot.slane %v1422_v40, 4  ;;  %1635 = vmatpush.msra.mxu0 %v1618_v41 }
 0x49c   : > { %v1446_v48 = vperm.slane %v1438_v45, %v2420_v3  ;;  %v1453_v49 = vrot.slane %v1434_v44, 4  ;;  %v1430_v50 = vperm.slane %v1424_v46, %v2420_v3 }
 0x49d   : > { %v1436_v51 = vsel %vm754_vm5, %v1435_v47, %v1416_v37  ;;  %v1616_v47 = vld [vmem:[%s2760_s15 + $0x28] sm:$0xff] }
 0x49e   : > { %v1454_v55 = vsel %vm754_vm5, %v1446_v48, %v1453_v49  ;;  %v1451_v52 = vrot.slane %v1446_v48, 4  ;;  %v1442_v53 = vperm.slane %v1436_v51, %v2420_v3  ;;  %v1449_v19 = vrot.slane %v1430_v50, 4  ;;  %v1472_v3 = vld [vmem:[#allocation7] sm:$0xff] }
 0x49f   : > { %1464 = vrot.lane.b32.xlu0 %v1454_v55, %s2130_s29  ;;  %1498 = vmatpush.msra.mxu2 %v1472_v3  ;;  %v1614_v55 = vld [vmem:[%s2760_s15 + $0x18] sm:$0xff] }
 0x4a0   : > { %v1452_v54 = vsel %vm754_vm5, %v1451_v52, %v1434_v44  ;;  %v1447_v56 = vrot.slane %v1442_v53, 4  ;;  %v1450_v57 = vsel %vm754_vm5, %v1442_v53, %v1449_v19  ;;  %v1617_v44 = vld [vmem:[%s2760_s15 + $0x30] sm:$0xff] }
 0x4a1   : > { %1460 = vrot.lane.b32.xlu2 %v1452_v54, %s2131_s17  ;;  %1456 = vrot.lane.b32.xlu1 %v1450_v57, %s2132_s16  ;;  %v1613_v19 = vld [vmem:[%s2760_s15 + $0x10] sm:$0xff]  ;;  %s1798_s17 = sshll.u32 %s2244_s28, 3  ;;  %s1650_s28 = scalar_lea.sflag [#allocation4], %s2332_s1 }
 0x4a2   : > { %v1448_v26 = vsel %vm754_vm5, %v1447_v56, %v1430_v50  ;;  %1636 = vmatpush.msra.mxu0 %v1617_v44  ;;  %v1615_v50 = vld [vmem:[%s2760_s15 + $0x20] sm:$0xff]  ;;  %v1612_v56 = vld [vmem:[%s2760_s15 + $0x8] sm:$0xff]  ;;  %s1660_s21 = scalar_lea.hbm %s2762_s13, %s1798_s17 }
 0x4a3   : > { %s1664_s9 = sshll.u32 %s1660_s21, 4  ;;  %s1665_s9 = int_to_ptr.hbm [resolvable:$true] %s1664_s9 }
 0x4a4   : > { %1637 = vmatpush.msra.mxu0 %v1616_v47  ;;  %s2057_s29 = sshra.s32 %s1665_s9, 4  ;;  %s2058_s29 = int_to_ptr.hbm [resolvable:$true] %s2057_s29 }
 0x4a5   : > { %s2059_s16 = scalar_lea.hbm %s2058_s29, 8  ;;  %p2064_p9 = scmp.lt.s32.totalorder %s2058_s29, %s2762_s13 }
 0x4a6   : > { %1638 = vmatpush.msra.mxu0 %v1615_v50  ;;  %p2060_p1 = scmp.ne.s32.totalorder %s2058_s29, %s2059_s16  ;;  %p2065_p10 = scmp.lt.s32.totalorder %s2063_s19, %s2059_s16 }
 0x4a8   : > { %1639 = vmatpush.msra.mxu0 %v1614_v55  ;;  %p2061_p4 = pnand %p2060_p1, %p2305_p3  ;;  %p2066_p2 = por %p2065_p10, %p2064_p9 }
 0x4aa   : > { %1640 = vmatpush.msra.mxu0 %v1613_v19  ;;  %p2062_p8 = pneg %p2061_p4 }
 0x4ac   : > { %1641 = vmatpush.msra.mxu0 %v1612_v56  ;;  %p2067_p11 = pnand %p2066_p2, %p2062_p8 }
 0x4fb   : > { %v1461_v30 = vpop.permute.xlu2 %1460 }
 0x511   : > { %v1465_v29 = vpop.permute.xlu0 %1464 }
 0x513   : > { %v1457_v61 = vpop.permute.xlu1 %1456 }
 0x514   : > { %v1467_v62 = vsel %vm1104_vm6, %v1448_v26, %v1457_v61  ;;  %v1611_v26 = vld [vmem:[%s2760_s15] sm:$0xff] }
 0x515   : > { %v1469_v63 = vsel %vm1468_vm7, %v1467_v62, %v1461_v30  ;;  %1642 = vmatpush.msra.mxu0 %v1611_v26 }
 0x516   : > { %v1471_v1 = vsel %vm1470_vm8, %v1469_v63, %v1465_v29 }
 0x517   : > { %1793 = vmatmul.msk.f32.vlgmr.msra.gmra.mxu2 %vm615_vm0, %v1471_v1 }
 0x59a   : > { %v1500_v4 = vpop.f32.mrf.mxu2 }
 0x59b   : > { %v1501_v5 = vadd.f32 %v1894_v2, %v1500_v4 }
 0x59d   : > { %v2626_v6 = vadd.f32 %v1501_v5, %v2350_v0  ;;  %v1536_v0 = vld [vmem:[#allocation8] sm:$0xff] }
 0x59e   : > { %1562 = vmatpush.msrb.mxu3 %v1536_v0 }
 0x59f   : > { %v1504_v7 = vsel %vm615_vm0, %v2626_v6, 0.0 }
 0x5a0   : > { %1505 = vadd.xlane.f32.xlu1 %v1504_v7 }
 0x613   : > { %v1506_v9 = vpop.xlane.xlu1 %1505 }
 0x614   : > { %v1507_v10 = vmul.f32 %v1506_v9, %v2354_v8 }
 0x616   : > { %v1508_v11 = vsub.f32 %v2626_v6, %v1507_v10 }
 0x618   : > { %v1509_v12 = vmul.f32 %v1508_v11, %v1508_v11 }
 0x61a   : > { %v1510_v13 = vsel %vm615_vm0, %v1509_v12, 0.0 }
 0x61b   : > { %1511 = vadd.xlane.f32.xlu0 %v1510_v13 }
 0x68e   : > { %v1512_v17 = vpop.xlane.xlu0 %1511 }
 0x68f   : > { %v1513_v18 = vmul.f32 %v1512_v17, %v2354_v8  ;;  %v1896_v8 = vld [vmem:[%s2720_s12] ss:$0 sm:$0xff] }
 0x691   : > { %v1514_v20 = vadd.f32 1e-06, %v1513_v18 }
 0x693   : > { %1919 = vrsqrt.f32 %v1514_v20  ;;  %vm1521_vm10 = vweird.f32 %v1514_v20 }
 0x699   : > { %v1920_v21 = vpop.eup %1919 }
 0x69a   : > { %v1516_v22 = vmul.f32 %v1920_v21, %v1514_v20  ;;  %vm1522_vm9 = vweird.f32 %v1920_v21  ;;  %v1898_v20 = vld [vmem:[%s2761_s24] ss:$0 sm:$0xff] }
 0x69b   : > { %vm1523_vm11 = vmor %vm1521_vm10, %vm1522_vm9 }
 0x69c   : > { %v1517_v23 = vmul.f32 %v1920_v21, %v1516_v22 }
 0x69e   : > { %v1518_v24 = vmul.f32 0.5, %v1517_v23 }
 0x6a0   : > { %v1519_v25 = vsub.f32 1.5, %v1518_v24 }
 0x6a2   : > { %v1520_v27 = vmul.f32 %v1920_v21, %v1519_v25 }
 0x6a4   : > { %v1524_v31 = vsel %vm1523_vm11, %v1920_v21, %v1520_v27 }
 0x6a5   : > { %v1525_v32 = vmul.f32 %v1524_v31, %v1508_v11 }
 0x6a7   : > { %v1530_v33 = vmul.f32 %v1895_v28, %v1525_v32 }
 0x6a9   : > { %v1535_v34 = vadd.f32 %v1896_v8, %v1530_v33 }
 0x6ab   : > { %1794 = vmatmul.msk.f32.vlgmr.msrb.gmra.mxu3 %vm615_vm0, %v1535_v34 }
 0x72e   : > { %v1564_v36 = vpop.f32.mrf.mxu3 }
 0x72f   : > { %v1565_v37 = vadd.f32 %v1897_v35, %v1564_v36 }
 0x731   : > { %v1568_v38 = vmul.f32 0.70710677, %v1565_v37  ;;  %v1567_v0 = vmul.f32 0.5, %v1565_v37 }
 0x733   : > { %v1569_v39 = vmul.f32 %v1568_v38, %v1568_v38 }
 0x735   : > { %v1570_v40 = vmin.f32 %v1569_v39, 16.0 }
 0x737   : > { %v1571_v42 = vmul.f32 2.1237322e-06, %v1570_v40  ;;  %v1582_v43 = vmul.f32 3.8918573e-05, %v1570_v40 }
 0x739   : > { %v1572_v45 = vadd.f32 0.00028619796, %v1571_v42  ;;  %v1583_v46 = vadd.f32 0.001143296, %v1582_v43 }
 0x73b   : > { %v1573_v48 = vmul.f32 %v1572_v45, %v1570_v40  ;;  %v1584_v49 = vmul.f32 %v1583_v46, %v1570_v40 }
 0x73d   : > { %v1585_v51 = vadd.f32 0.014752088, %v1584_v49  ;;  %v1574_v52 = vadd.f32 0.0036580483, %v1573_v48 }
 0x73f   : > { %v1586_v53 = vmul.f32 %v1585_v51, %v1570_v40  ;;  %v1575_v57 = vmul.f32 %v1574_v52, %v1570_v40 }
 0x741   : > { %v1587_v54 = vadd.f32 0.112945676, %v1586_v53  ;;  %v1576_v60 = vadd.f32 0.05243302, %v1575_v57 }
 0x743   : > { %v1588_v58 = vmul.f32 %v1587_v54, %v1570_v40  ;;  %v1577_v30 = vmul.f32 %v1576_v60, %v1570_v40 }
 0x745   : > { %v1589_v59 = vadd.f32 0.4994258, %v1588_v58  ;;  %v1578_v62 = vadd.f32 0.18741608, %v1577_v30 }
 0x747   : > { %v1590_v3 = vmul.f32 %v1589_v59, %v1570_v40  ;;  %v1579_v63 = vmul.f32 %v1578_v62, %v1570_v40 }
 0x749   : > { %v1591_v61 = vadd.f32 1.0, %v1590_v3  ;;  %v1580_v5 = vadd.f32 1.1283791, %v1579_v63 }
 0x74b   : > { %1921 = vrcp.f32 %v1591_v61  ;;  %v1603_v4 = vand.u32 2147483648, %v1591_v61  ;;  %v1601_v9 = vand.u32 2147483647, %v1591_v61  ;;  %vm1597_vm13 = vweird.f32 %v1591_v61 }
 0x74c   : > { %v1581_v12 = vmul.f32 %v1580_v5, %v1568_v38 }
 0x74d   : > { %v1604_v11 = vor.u32 1.1754944e-38, %v1603_v4  ;;  %vm1602_vm15 = vcmp.eq.f32.partialorder %v1601_v9, 8.507059e+37 }
 0x751   : > { %v1922_v29 = vpop.eup %1921 }
 0x752   : > { %v1593_v1 = vmul.f32 %v1922_v29, %v1591_v61  ;;  %vm1598_vm12 = vweird.f32 %v1922_v29 }
 0x753   : > { %vm1599_vm14 = vmor %vm1597_vm13, %vm1598_vm12 }
 0x754   : > { %v1594_v2 = vsub.f32 1.0, %v1593_v1 }
 0x756   : > { %v1595_v7 = vmul.f32 %v1922_v29, %v1594_v2 }
 0x758   : > { %v1596_v10 = vadd.f32 %v1922_v29, %v1595_v7 }
 0x75a   : > { %v1600_v13 = vsel %vm1599_vm14, %v1922_v29, %v1596_v10 }
 0x75b   : > { %v1605_v14 = vsel %vm1602_vm15, %v1604_v11, %v1600_v13 }
 0x75c   : > { %v1606_v15 = vmul.f32 %v1605_v14, %v1581_v12 }
 0x75e   : > { %v1795_v16 = vclamps-f32 %v1606_v15, 1.0 }
 0x760   : > { %v1609_v17 = vadd.f32 1.0, %v1795_v16 }
 0x762   : > { %v1610_v18 = vmul.f32 %v1609_v17, %v1567_v0 }
 0x764   : > { %1796 = vmatmul.msk.f32.vlgmr.msra.gmra.mxu0 %vm1623_vm1, %v1610_v18 }
 0x7e1   : > { %v1644_v21 = vpop.f32.mrf.mxu0 }
 0x7e2   : > { %v1645_v22 = vadd.f32 %v1898_v20, %v1644_v21 }
 0x7e4   : > { %v1647_v23 = vadd.f32 %v1645_v22, %v2626_v6 }
 0x7e6   : > { %1648 = vst.msk [vmem:[%s613_s20] sm:$0xff] %vm615_vm0, %v1647_v23 }
 0x7e7   : > { %2070 = shalt.err (!%p2067_p11)
}
 0x7e8   : > { %1815 = dma.vmem_to_hbm [thread:$0]  (%p2305_p3), %s1663_s30, 128, %s1665_s9, %s1650_s28  }
 0x7e9 PF: > { %s2764_s1 = sld [smem:[#allocation15_spill]]  ;;  %p2766_p12 = scmp.ge.s32.totalorder %s2117_s27, 2 }
 0x7eb   : > { %p1832_p13 = pnand %p2766_p12, %p2258_p6 }
 0x7ed   : > { %p1833_p0 = pneg %p1832_p13 }
 0x7ef   : > { %s1676_s21 = sand.u32 1, %s2764_s1  }
 0x7f0   : > { %s1677_s20 = scalar_lea.sflag [#allocation4], %s1676_s21 }
 0x7f1   : > { %2100 = dma.done.wait (%p1833_p0), %s1677_s20, 128  }
 0x7f2   : > { %2102 = vsyncadd (%p1833_p0), %s1677_s20, 4294967168  ;;  %s2767_s27 = sld [smem:[#allocation18_spill]]  ;;  %s2770_s24 = smov %s2109_s25 }
 0x7f3   : > { %s2768_s29 = sld [smem:[#allocation16_spill]] }
 0x7f4   : > { %s2769_s26 = sld [smem:[#allocation19_spill]] }
 0x7f8   : > { %p32_p5 = scmp.ge.s32.totalorder %s2767_s27, 4  }
 0x7f9   : > { %s2771_s25 = smov %s2768_s29 }
 0x7fa   :  { %34 = sbr.rel (!%p32_p5) target bundleno = 15 (0xf), region = 145 }
 0x7ff   :  { %1683 = vsyncpa [#allocation3], 1 }
 0x800   :  { %1685 = vsyncpa [#allocation3 + $0x1], 1 }
 0x801   :  { %1686 = vsyncpa [#allocation6], 1 }
 0x802   :  { %1687 = vsyncpa [#allocation9], 1 }
 0x803   :  { %1688 = vsyncpa [#allocation4], 1 }
 0x804   :  { %1690 = vsyncpa [#allocation4 + $0x1], 1 }

</bundles_post_ra>
